<compile_context>
chip_gen: v7x
topology: tpu7x:2x2x1
jax: 0.10.0
libtpu: 0.0.40
codegen_flags: <defaults>
</compile_context>

<pallas_src>
import functools
from math import sqrt

import jax
import jax.numpy as jnp
from jax import lax
from jax.experimental import pallas as pl
from jax.experimental.pallas import tpu as pltpu


# ---------------------------------------------------------------------------
# Fused attention-layer kernel (one grid step == Bt batch elements)
# ---------------------------------------------------------------------------
def _attention_layer_kernel(xq_ref, xk_ref, xv_ref,
                            wqkv_ref, bqkv_ref, wo_ref, bo_ref,
                            o_ref,
                            *, n_heads, d_k, d_v, mix):
    Bt, L, d_in = xq_ref.shape
    _, S, _ = xk_ref.shape
    d_out = o_ref.shape[2]
    H = n_heads
    Hdk = H * d_k
    Hdv = H * d_v

    # Resident weights (loaded once per grid step, bf16) and f32 biases.
    w_qkv = wqkv_ref[...]                       # (d_in, 2*Hdk + Hdv) bf16
    b_qkv = bqkv_ref[...]                       # (1, 2*Hdk + Hdv)    f32
    wo = wo_ref[...]                            # (Hdv, d_out)        bf16
    bo = bo_ref[...]                            # (1, d_out)          f32

    # ---- fused Q/K/V projections; batch block flattened into the MXU M dim ----
    xq = xq_ref[...].reshape(Bt * L, d_in)      # bf16
    xk = xk_ref[...].reshape(Bt * S, d_in)
    xv = xv_ref[...].reshape(Bt * S, d_in)

    q = (jnp.dot(xq, w_qkv[:, 0:Hdk], preferred_element_type=jnp.float32)
         + b_qkv[:, 0:Hdk]).astype(jnp.bfloat16)                 # scale pre-folded
    k = (jnp.dot(xk, w_qkv[:, Hdk:2 * Hdk], preferred_element_type=jnp.float32)
         + b_qkv[:, Hdk:2 * Hdk]).astype(jnp.bfloat16)
    v = (jnp.dot(xv, w_qkv[:, 2 * Hdk:2 * Hdk + Hdv], preferred_element_type=jnp.float32)
         + b_qkv[:, 2 * Hdk:2 * Hdk + Hdv]).astype(jnp.bfloat16)

    contract_last = (((1,), (1,)), ((), ()))    # q @ k with both last dims contracted

    for b in range(Bt):
        q_b = q[b * L:(b + 1) * L]              # (L, Hdk)
        k_b = k[b * S:(b + 1) * S]              # (S, Hdk)
        v_b = v[b * S:(b + 1) * S]              # (S, Hdv)

        if mix:
            heads = []
        else:
            acc = jnp.zeros((L, d_out), jnp.float32)

        for h in range(H):
            qh = q_b[:, h * d_k:(h + 1) * d_k]
            kh = k_b[:, h * d_k:(h + 1) * d_k]
            vh = v_b[:, h * d_v:(h + 1) * d_v]

            # scores: no explicit transpose of kh (feeds the MXU directly)
            s = lax.dot_general(qh, kh, contract_last,
                                preferred_element_type=jnp.float32)   # (L, S) f32
            m = jnp.max(s, axis=-1, keepdims=True)
            p = jnp.exp(s - m)
            denom = jnp.sum(p, axis=-1, keepdims=True)
            a = (p * pl.reciprocal(denom, approx=False)).astype(jnp.bfloat16)
            head = jnp.dot(a, vh, preferred_element_type=jnp.float32)  # (L, d_v) f32

            if mix:
                heads.append(head)
            else:
                # Fold this head's context straight into the output projection:
                # out += head_h @ Wo[h*d_v:(h+1)*d_v, :]  (static sublane slice).
                acc = acc + jnp.dot(head.astype(jnp.bfloat16),
                                    wo[h * d_v:(h + 1) * d_v, :],
                                    preferred_element_type=jnp.float32)

        if mix:
            # torch: (L,H,d_v) -> transpose(2,1) -> contiguous -> view(L, H*d_v)
            ctx = jnp.stack(heads, axis=0).reshape(L, Hdv).astype(jnp.bfloat16)
            out = jnp.dot(ctx, wo, preferred_element_type=jnp.float32) + bo
        else:
            out = acc + bo

        # Full-width lane-dense store of this batch element's (L, d_out) slab.
        o_ref[b] = out.astype(o_ref.dtype)


# ---------------------------------------------------------------------------
# VMEM budgeting / batch-block selection
# ---------------------------------------------------------------------------
def _vmem_bytes_estimate(bt, L, S, d_model, Hdk, Hdv, d_out):
    bf, f32 = 2, 4
    est = 2 * bt * L * d_model * bf              # queries (double-buffered, bf16)
    est += 2 * 2 * bt * S * d_model * bf         # keys + values
    est += 2 * bt * L * d_out * f32              # output (double-buffered)
    est += 2 * (d_model * (2 * Hdk + Hdv) * bf + (2 * Hdk + Hdv) * f32)   # fused qkv W/b
    est += 2 * (Hdv * d_out * bf + d_out * f32)                           # Wo / bo
    est += bt * L * Hdk * (bf + f32)             # q (bf16 + f32 projection temp)
    est += bt * S * (Hdk + Hdv) * (bf + f32)     # k, v
    est += 4 * L * S * f32                       # scores / exp / probs headroom
    est += 2 * L * d_out * f32                   # accumulator / out
    return est


def _pick_batch_block(B, L, S, d_model, Hdk, Hdv, d_out, budget=48 * 2 ** 20):
    bt = 1
    for cand in range(1, B + 1):
        if B % cand:
            continue
        if _vmem_bytes_estimate(cand, L, S, d_model, Hdk, Hdv, d_out) > budget:
            break
        bt = cand
        if cand * L >= 512:          # projection M dim already fills the MXU
            break
    return bt


# ---------------------------------------------------------------------------
# Wrapper
# ---------------------------------------------------------------------------
def attention_layer_forward(params, queries, keys, values, attn_mask=None,
                            n_heads=4, mix=False):
    # TODO(synk): attn_mask ignored — matches FullAttention(mask_flag=False).
    del attn_mask
    B, L, d_model = queries.shape
    _, S, _ = keys.shape
    H = n_heads
    d_k = params["Wq"].shape[1] // H
    d_v = params["Wv"].shape[1] // H
    Hdk, Hdv = H * d_k, H * d_v
    d_out = params["Wo"].shape[1]
    out_dtype = queries.dtype
    scale = 1.0 / sqrt(d_k)

    # Fold softmax scale into the Q projection; fuse Q|K|V weights into one
    # resident bf16 ref; biases stay f32 (added after f32 accumulation).
    w_qkv = jnp.concatenate(
        [params["Wq"] * scale, params["Wk"], params["Wv"]], axis=1
    ).astype(jnp.bfloat16)
    b_qkv = jnp.concatenate(
        [params["bq"] * scale, params["bk"], params["bv"]], axis=0
    ).reshape(1, -1).astype(jnp.float32)
    wo = params["Wo"].astype(jnp.bfloat16)
    bo = params["bo"].reshape(1, -1).astype(jnp.float32)

    # bf16 activations: MXU-native operands, half the input HBM traffic.
    xq = queries.astype(jnp.bfloat16)
    xk = keys.astype(jnp.bfloat16)
    xv = values.astype(jnp.bfloat16)

    Bt = _pick_batch_block(B, L, S, d_model, Hdk, Hdv, d_out)
    vmem_limit = int(min(64 * 2 ** 20,            # valid on v7x (64 MiB physical)
                         max(16 * 2 ** 20,
                             2 * _vmem_bytes_estimate(Bt, L, S, d_model,
                                                      Hdk, Hdv, d_out))))

    kernel = functools.partial(_attention_layer_kernel,
                               n_heads=H, d_k=d_k, d_v=d_v, mix=mix)

    # Full blocks along the last two dims (== array extents) satisfy the (8,128)
    # rule; weights use constant index_maps so they stay resident across grid steps.
    full2d = lambda arr: pl.BlockSpec(arr.shape, lambda b: (0, 0))

    out = pl.pallas_call(
        kernel,
        out_shape=jax.ShapeDtypeStruct((B, L, d_out), out_dtype),
        grid=(B // Bt,),
        in_specs=[
            pl.BlockSpec((Bt, L, d_model), lambda b: (b, 0, 0)),   # queries
            pl.BlockSpec((Bt, S, d_model), lambda b: (b, 0, 0)),   # keys
            pl.BlockSpec((Bt, S, d_model), lambda b: (b, 0, 0)),   # values
            full2d(w_qkv), full2d(b_qkv),                          # fused QKV weights
            full2d(wo), full2d(bo),                                # output projection
        ],
        out_specs=pl.BlockSpec((Bt, L, d_out), lambda b: (b, 0, 0)),
        compiler_params=pltpu.CompilerParams(
            dimension_semantics=("parallel",),
            vmem_limit_bytes=vmem_limit),
    )(xq, xk, xv, w_qkv, b_qkv, wo, bo)

    return out, None   # output_attention=False -> attn is None


# ---------------------------------------------------------------------------
# Deterministic parameter init (shapes from the nn.Linear layers in __init__)
# ---------------------------------------------------------------------------
def init_params(key, d_model, n_heads, d_keys=None, d_values=None, dtype=jnp.float32):
    d_keys = d_keys or d_model // n_heads
    d_values = d_values or d_model // n_heads
    ks = jax.random.split(key, 8)

    def linear_init(kw, kb, d_in, d_out):
        bound = 1.0 / sqrt(d_in)
        # Stored as (d_in, d_out) so the kernel does x @ W (== x @ W_torch.T).
        W = jax.random.uniform(kw, (d_in, d_out), dtype, -bound, bound)
        b = jax.random.uniform(kb, (d_out,), dtype, -bound, bound)
        return W, b

    Wq, bq = linear_init(ks[0], ks[1], d_model, d_keys * n_heads)
    Wk, bk = linear_init(ks[2], ks[3], d_model, d_keys * n_heads)
    Wv, bv = linear_init(ks[4], ks[5], d_model, d_values * n_heads)
    Wo, bo = linear_init(ks[6], ks[7], d_values * n_heads, d_model)
    return dict(Wq=Wq, bq=bq, Wk=Wk, bk=bk, Wv=Wv, bv=bv, Wo=Wo, bo=bo)


# ---------------------------------------------------------------------------
# Pure-JAX f32 reference (mirrors the PyTorch math, including mix=True view trick)
# ---------------------------------------------------------------------------
def ref_forward(params, q_in, k_in, v_in, n_heads, mix=False):
    B, L, _ = q_in.shape
    S = k_in.shape[1]
    H = n_heads
    dk = params["Wq"].shape[1] // H
    dv = params["Wv"].shape[1] // H
    q = (q_in @ params["Wq"] + params["bq"]).reshape(B, L, H, dk)
    k = (k_in @ params["Wk"] + params["bk"]).reshape(B, S, H, dk)
    v = (v_in @ params["Wv"] + params["bv"]).reshape(B, S, H, dv)
    scores = jnp.einsum("blhe,bshe->bhls", q, k) / sqrt(dk)
    A = jax.nn.softmax(scores, axis=-1)
    o = jnp.einsum("bhls,bshd->blhd", A, v)          # (B, L, H, dv)
    if mix:
        o = jnp.transpose(o, (0, 2, 1, 3))           # (B, H, L, dv)
    o = o.reshape(B, L, H * dv)
    return o @ params["Wo"] + params["bo"]


if __name__ == "__main__":
    B, L, S = 2, 8, 8
    d_model, n_heads = 32, 4

    key = jax.random.PRNGKey(0)
    kq, kk, kv, kp = jax.random.split(key, 4)
    queries = jax.random.normal(kq, (B, L, d_model), jnp.float32)
    keys_in = jax.random.normal(kk, (B, S, d_model), jnp.float32)
    values = jax.random.normal(kv, (B, S, d_model), jnp.float32)
    params = init_params(kp, d_model, n_heads)

    # mix=False path (module default)
    out, attn = attention_layer_forward(params, queries, keys_in, values,
                                        attn_mask=None, n_heads=n_heads, mix=False)
    out = jax.block_until_ready(out)
    assert out.shape == (B, L, d_model)
    assert attn is None

    # mix=True path (covers the transpose().contiguous().view() reinterpretation)
    out_mix, _ = attention_layer_forward(params, queries, keys_in, values,
                                         attn_mask=None, n_heads=n_heads, mix=True)
    out_mix = jax.block_until_ready(out_mix)

    ref = ref_forward(params, queries, keys_in, values, n_heads, mix=False)
    ref_mix = ref_forward(params, queries, keys_in, values, n_heads, mix=True)

    # Tolerance reflects bf16 operands with f32 accumulation vs the f32 reference.
    assert jnp.allclose(out, ref, atol=5e-2, rtol=5e-2), "mismatch vs reference (mix=False)"
    assert jnp.allclose(out_mix, ref_mix, atol=5e-2, rtol=5e-2), "mismatch vs reference (mix=True)"
    print("KERNEL_OK")
</pallas_src>

<mosaic_0001>
module attributes {stable_mosaic.version = 11 : i64} {
  func.func @_attention_layer_kernel(%arg0: i32, %arg1: memref<2x8x32xbf16, #tpu.memory_space<vmem>>, %arg2: memref<2x8x32xbf16, #tpu.memory_space<vmem>>, %arg3: memref<2x8x32xbf16, #tpu.memory_space<vmem>>, %arg4: memref<32x96xbf16, #tpu.memory_space<vmem>>, %arg5: memref<1x96xf32, #tpu.memory_space<vmem>>, %arg6: memref<32x32xbf16, #tpu.memory_space<vmem>>, %arg7: memref<1x32xf32, #tpu.memory_space<vmem>>, %arg8: memref<2x8x32xf32, #tpu.memory_space<vmem>>) attributes {dimension_semantics = [#tpu.dimension_semantics<parallel>], iteration_bounds = array<i64: 1>, scalar_prefetch = 0 : i64, scratch_operands = 0 : i64, tpu.core_type = #tpu.core_type<tc>, window_params = [{transform_indices = @transform_0, window_bounds = array<i64: 2, 8, 32>}, {transform_indices = @transform_1, window_bounds = array<i64: 2, 8, 32>}, {transform_indices = @transform_2, window_bounds = array<i64: 2, 8, 32>}, {pipeline_mode = #tpu.pipeline_mode<synchronous>, transform_indices = @transform_3, window_bounds = array<i64: 32, 96>}, {pipeline_mode = #tpu.pipeline_mode<synchronous>, transform_indices = @transform_4, window_bounds = array<i64: 1, 96>}, {pipeline_mode = #tpu.pipeline_mode<synchronous>, transform_indices = @transform_5, window_bounds = array<i64: 32, 32>}, {pipeline_mode = #tpu.pipeline_mode<synchronous>, transform_indices = @transform_6, window_bounds = array<i64: 1, 32>}, {transform_indices = @transform_7, window_bounds = array<i64: 2, 8, 32>}]} {
    %c0 = arith.constant 0 : index
    %c0_0 = arith.constant 0 : index
    %0 = vector.load %arg4[%c0, %c0_0] : memref<32x96xbf16, #tpu.memory_space<vmem>>, vector<32x96xbf16>
    %c0_1 = arith.constant 0 : index
    %c0_2 = arith.constant 0 : index
    %1 = vector.load %arg5[%c0_1, %c0_2] : memref<1x96xf32, #tpu.memory_space<vmem>>, vector<1x96xf32>
    %c0_3 = arith.constant 0 : index
    %c0_4 = arith.constant 0 : index
    %2 = vector.load %arg6[%c0_3, %c0_4] : memref<32x32xbf16, #tpu.memory_space<vmem>>, vector<32x32xbf16>
    %c0_5 = arith.constant 0 : index
    %c0_6 = arith.constant 0 : index
    %3 = vector.load %arg7[%c0_5, %c0_6] : memref<1x32xf32, #tpu.memory_space<vmem>>, vector<1x32xf32>
    %c0_7 = arith.constant 0 : index
    %c0_8 = arith.constant 0 : index
    %c0_9 = arith.constant 0 : index
    %4 = vector.load %arg1[%c0_7, %c0_8, %c0_9] : memref<2x8x32xbf16, #tpu.memory_space<vmem>>, vector<2x8x32xbf16>
    %5 = vector.shape_cast %4 : vector<2x8x32xbf16> to vector<16x32xbf16>
    %c0_10 = arith.constant 0 : index
    %c0_11 = arith.constant 0 : index
    %c0_12 = arith.constant 0 : index
    %6 = vector.load %arg2[%c0_10, %c0_11, %c0_12] : memref<2x8x32xbf16, #tpu.memory_space<vmem>>, vector<2x8x32xbf16>
    %7 = vector.shape_cast %6 : vector<2x8x32xbf16> to vector<16x32xbf16>
    %c0_13 = arith.constant 0 : index
    %c0_14 = arith.constant 0 : index
    %c0_15 = arith.constant 0 : index
    %8 = vector.load %arg3[%c0_13, %c0_14, %c0_15] : memref<2x8x32xbf16, #tpu.memory_space<vmem>>, vector<2x8x32xbf16>
    %9 = vector.shape_cast %8 : vector<2x8x32xbf16> to vector<16x32xbf16>
    %10 = vector.extract_strided_slice %0 {offsets = [0, 0], sizes = [32, 32], strides = [1, 1]} : vector<32x96xbf16> to vector<32x32xbf16>
    %cst = arith.constant dense<0.000000e+00> : vector<16x32xf32>
    %11 = tpu.matmul %5, %10, %cst {dimension_numbers = #tpu.dot_dimension_numbers<[1], [0], [0], [1], [0, 0, 1, 1], [], []>} : vector<16x32xbf16>, vector<32x32xbf16>, vector<16x32xf32> -> vector<16x32xf32>
    %12 = vector.extract_strided_slice %1 {offsets = [0, 0], sizes = [1, 32], strides = [1, 1]} : vector<1x96xf32> to vector<1x32xf32>
    %13 = vector.broadcast %12 : vector<1x32xf32> to vector<16x32xf32>
    %14 = arith.addf %11, %13 : vector<16x32xf32>
    %15 = arith.truncf %14 : vector<16x32xf32> to vector<16x32xbf16>
    %16 = vector.extract_strided_slice %0 {offsets = [0, 32], sizes = [32, 32], strides = [1, 1]} : vector<32x96xbf16> to vector<32x32xbf16>
    %cst_16 = arith.constant dense<0.000000e+00> : vector<16x32xf32>
    %17 = tpu.matmul %7, %16, %cst_16 {dimension_numbers = #tpu.dot_dimension_numbers<[1], [0], [0], [1], [0, 0, 1, 1], [], []>} : vector<16x32xbf16>, vector<32x32xbf16>, vector<16x32xf32> -> vector<16x32xf32>
    %18 = vector.extract_strided_slice %1 {offsets = [0, 32], sizes = [1, 32], strides = [1, 1]} : vector<1x96xf32> to vector<1x32xf32>
    %19 = vector.broadcast %18 : vector<1x32xf32> to vector<16x32xf32>
    %20 = arith.addf %17, %19 : vector<16x32xf32>
    %21 = arith.truncf %20 : vector<16x32xf32> to vector<16x32xbf16>
    %22 = vector.extract_strided_slice %0 {offsets = [0, 64], sizes = [32, 32], strides = [1, 1]} : vector<32x96xbf16> to vector<32x32xbf16>
    %cst_17 = arith.constant dense<0.000000e+00> : vector<16x32xf32>
    %23 = tpu.matmul %9, %22, %cst_17 {dimension_numbers = #tpu.dot_dimension_numbers<[1], [0], [0], [1], [0, 0, 1, 1], [], []>} : vector<16x32xbf16>, vector<32x32xbf16>, vector<16x32xf32> -> vector<16x32xf32>
    %24 = vector.extract_strided_slice %1 {offsets = [0, 64], sizes = [1, 32], strides = [1, 1]} : vector<1x96xf32> to vector<1x32xf32>
    %25 = vector.broadcast %24 : vector<1x32xf32> to vector<16x32xf32>
    %26 = arith.addf %23, %25 : vector<16x32xf32>
    %27 = arith.truncf %26 : vector<16x32xf32> to vector<16x32xbf16>
    %28 = vector.extract_strided_slice %15 {offsets = [0, 0], sizes = [8, 32], strides = [1, 1]} : vector<16x32xbf16> to vector<8x32xbf16>
    %29 = vector.extract_strided_slice %21 {offsets = [0, 0], sizes = [8, 32], strides = [1, 1]} : vector<16x32xbf16> to vector<8x32xbf16>
    %30 = vector.extract_strided_slice %27 {offsets = [0, 0], sizes = [8, 32], strides = [1, 1]} : vector<16x32xbf16> to vector<8x32xbf16>
    %cst_18 = arith.constant 0.000000e+00 : f32
    %31 = vector.broadcast %cst_18 : f32 to vector<8x32xf32>
    %32 = vector.extract_strided_slice %28 {offsets = [0, 0], sizes = [8, 8], strides = [1, 1]} : vector<8x32xbf16> to vector<8x8xbf16>
    %33 = vector.extract_strided_slice %29 {offsets = [0, 0], sizes = [8, 8], strides = [1, 1]} : vector<8x32xbf16> to vector<8x8xbf16>
    %34 = vector.extract_strided_slice %30 {offsets = [0, 0], sizes = [8, 8], strides = [1, 1]} : vector<8x32xbf16> to vector<8x8xbf16>
    %cst_19 = arith.constant dense<0.000000e+00> : vector<8x8xf32>
    %35 = tpu.matmul %32, %33, %cst_19 {dimension_numbers = #tpu.dot_dimension_numbers<[1], [1], [0], [0], [0, 0, 1, 0], [], []>} : vector<8x8xbf16>, vector<8x8xbf16>, vector<8x8xf32> -> vector<8x8xf32>
    %cst_20 = arith.constant dense<0xFF800000> : vector<8xf32>
    %36 = vector.multi_reduction <maximumf>, %35, %cst_20 [1] : vector<8x8xf32> to vector<8xf32>
    %37 = vector.shape_cast %36 : vector<8xf32> to vector<8x1xf32>
    %38 = vector.broadcast %37 : vector<8x1xf32> to vector<8x8xf32>
    %39 = arith.subf %35, %38 : vector<8x8xf32>
    %40 = math.exp %39 : vector<8x8xf32>
    %cst_21 = arith.constant dense<0.000000e+00> : vector<8xf32>
    %41 = vector.multi_reduction <add>, %40, %cst_21 [1] : vector<8x8xf32> to vector<8xf32>
    %42 = vector.shape_cast %41 : vector<8xf32> to vector<8x1xf32>
    %43 = tpu.reciprocal %42 : vector<8x1xf32> -> vector<8x1xf32>
    %44 = vector.broadcast %43 : vector<8x1xf32> to vector<8x8xf32>
    %45 = arith.mulf %40, %44 : vector<8x8xf32>
    %46 = arith.truncf %45 : vector<8x8xf32> to vector<8x8xbf16>
    %cst_22 = arith.constant dense<0.000000e+00> : vector<8x8xf32>
    %47 = tpu.matmul %46, %34, %cst_22 {dimension_numbers = #tpu.dot_dimension_numbers<[1], [0], [0], [1], [0, 0, 1, 1], [], []>} : vector<8x8xbf16>, vector<8x8xbf16>, vector<8x8xf32> -> vector<8x8xf32>
    %48 = arith.truncf %47 : vector<8x8xf32> to vector<8x8xbf16>
    %49 = vector.extract_strided_slice %2 {offsets = [0, 0], sizes = [8, 32], strides = [1, 1]} : vector<32x32xbf16> to vector<8x32xbf16>
    %cst_23 = arith.constant dense<0.000000e+00> : vector<8x32xf32>
    %50 = tpu.matmul %48, %49, %cst_23 {dimension_numbers = #tpu.dot_dimension_numbers<[1], [0], [0], [1], [0, 0, 1, 1], [], []>} : vector<8x8xbf16>, vector<8x32xbf16>, vector<8x32xf32> -> vector<8x32xf32>
    %51 = arith.addf %31, %50 : vector<8x32xf32>
    %52 = vector.extract_strided_slice %28 {offsets = [0, 8], sizes = [8, 8], strides = [1, 1]} : vector<8x32xbf16> to vector<8x8xbf16>
    %53 = vector.extract_strided_slice %29 {offsets = [0, 8], sizes = [8, 8], strides = [1, 1]} : vector<8x32xbf16> to vector<8x8xbf16>
    %54 = vector.extract_strided_slice %30 {offsets = [0, 8], sizes = [8, 8], strides = [1, 1]} : vector<8x32xbf16> to vector<8x8xbf16>
    %cst_24 = arith.constant dense<0.000000e+00> : vector<8x8xf32>
    %55 = tpu.matmul %52, %53, %cst_24 {dimension_numbers = #tpu.dot_dimension_numbers<[1], [1], [0], [0], [0, 0, 1, 0], [], []>} : vector<8x8xbf16>, vector<8x8xbf16>, vector<8x8xf32> -> vector<8x8xf32>
    %cst_25 = arith.constant dense<0xFF800000> : vector<8xf32>
    %56 = vector.multi_reduction <maximumf>, %55, %cst_25 [1] : vector<8x8xf32> to vector<8xf32>
    %57 = vector.shape_cast %56 : vector<8xf32> to vector<8x1xf32>
    %58 = vector.broadcast %57 : vector<8x1xf32> to vector<8x8xf32>
    %59 = arith.subf %55, %58 : vector<8x8xf32>
    %60 = math.exp %59 : vector<8x8xf32>
    %cst_26 = arith.constant dense<0.000000e+00> : vector<8xf32>
    %61 = vector.multi_reduction <add>, %60, %cst_26 [1] : vector<8x8xf32> to vector<8xf32>
    %62 = vector.shape_cast %61 : vector<8xf32> to vector<8x1xf32>
    %63 = tpu.reciprocal %62 : vector<8x1xf32> -> vector<8x1xf32>
    %64 = vector.broadcast %63 : vector<8x1xf32> to vector<8x8xf32>
    %65 = arith.mulf %60, %64 : vector<8x8xf32>
    %66 = arith.truncf %65 : vector<8x8xf32> to vector<8x8xbf16>
    %cst_27 = arith.constant dense<0.000000e+00> : vector<8x8xf32>
    %67 = tpu.matmul %66, %54, %cst_27 {dimension_numbers = #tpu.dot_dimension_numbers<[1], [0], [0], [1], [0, 0, 1, 1], [], []>} : vector<8x8xbf16>, vector<8x8xbf16>, vector<8x8xf32> -> vector<8x8xf32>
    %68 = arith.truncf %67 : vector<8x8xf32> to vector<8x8xbf16>
    %69 = vector.extract_strided_slice %2 {offsets = [8, 0], sizes = [8, 32], strides = [1, 1]} : vector<32x32xbf16> to vector<8x32xbf16>
    %cst_28 = arith.constant dense<0.000000e+00> : vector<8x32xf32>
    %70 = tpu.matmul %68, %69, %cst_28 {dimension_numbers = #tpu.dot_dimension_numbers<[1], [0], [0], [1], [0, 0, 1, 1], [], []>} : vector<8x8xbf16>, vector<8x32xbf16>, vector<8x32xf32> -> vector<8x32xf32>
    %71 = arith.addf %51, %70 : vector<8x32xf32>
    %72 = vector.extract_strided_slice %28 {offsets = [0, 16], sizes = [8, 8], strides = [1, 1]} : vector<8x32xbf16> to vector<8x8xbf16>
    %73 = vector.extract_strided_slice %29 {offsets = [0, 16], sizes = [8, 8], strides = [1, 1]} : vector<8x32xbf16> to vector<8x8xbf16>
    %74 = vector.extract_strided_slice %30 {offsets = [0, 16], sizes = [8, 8], strides = [1, 1]} : vector<8x32xbf16> to vector<8x8xbf16>
    %cst_29 = arith.constant dense<0.000000e+00> : vector<8x8xf32>
    %75 = tpu.matmul %72, %73, %cst_29 {dimension_numbers = #tpu.dot_dimension_numbers<[1], [1], [0], [0], [0, 0, 1, 0], [], []>} : vector<8x8xbf16>, vector<8x8xbf16>, vector<8x8xf32> -> vector<8x8xf32>
    %cst_30 = arith.constant dense<0xFF800000> : vector<8xf32>
    %76 = vector.multi_reduction <maximumf>, %75, %cst_30 [1] : vector<8x8xf32> to vector<8xf32>
    %77 = vector.shape_cast %76 : vector<8xf32> to vector<8x1xf32>
    %78 = vector.broadcast %77 : vector<8x1xf32> to vector<8x8xf32>
    %79 = arith.subf %75, %78 : vector<8x8xf32>
    %80 = math.exp %79 : vector<8x8xf32>
    %cst_31 = arith.constant dense<0.000000e+00> : vector<8xf32>
    %81 = vector.multi_reduction <add>, %80, %cst_31 [1] : vector<8x8xf32> to vector<8xf32>
    %82 = vector.shape_cast %81 : vector<8xf32> to vector<8x1xf32>
    %83 = tpu.reciprocal %82 : vector<8x1xf32> -> vector<8x1xf32>
    %84 = vector.broadcast %83 : vector<8x1xf32> to vector<8x8xf32>
    %85 = arith.mulf %80, %84 : vector<8x8xf32>
    %86 = arith.truncf %85 : vector<8x8xf32> to vector<8x8xbf16>
    %cst_32 = arith.constant dense<0.000000e+00> : vector<8x8xf32>
    %87 = tpu.matmul %86, %74, %cst_32 {dimension_numbers = #tpu.dot_dimension_numbers<[1], [0], [0], [1], [0, 0, 1, 1], [], []>} : vector<8x8xbf16>, vector<8x8xbf16>, vector<8x8xf32> -> vector<8x8xf32>
    %88 = arith.truncf %87 : vector<8x8xf32> to vector<8x8xbf16>
    %89 = vector.extract_strided_slice %2 {offsets = [16, 0], sizes = [8, 32], strides = [1, 1]} : vector<32x32xbf16> to vector<8x32xbf16>
    %cst_33 = arith.constant dense<0.000000e+00> : vector<8x32xf32>
    %90 = tpu.matmul %88, %89, %cst_33 {dimension_numbers = #tpu.dot_dimension_numbers<[1], [0], [0], [1], [0, 0, 1, 1], [], []>} : vector<8x8xbf16>, vector<8x32xbf16>, vector<8x32xf32> -> vector<8x32xf32>
    %91 = arith.addf %71, %90 : vector<8x32xf32>
    %92 = vector.extract_strided_slice %28 {offsets = [0, 24], sizes = [8, 8], strides = [1, 1]} : vector<8x32xbf16> to vector<8x8xbf16>
    %93 = vector.extract_strided_slice %29 {offsets = [0, 24], sizes = [8, 8], strides = [1, 1]} : vector<8x32xbf16> to vector<8x8xbf16>
    %94 = vector.extract_strided_slice %30 {offsets = [0, 24], sizes = [8, 8], strides = [1, 1]} : vector<8x32xbf16> to vector<8x8xbf16>
    %cst_34 = arith.constant dense<0.000000e+00> : vector<8x8xf32>
    %95 = tpu.matmul %92, %93, %cst_34 {dimension_numbers = #tpu.dot_dimension_numbers<[1], [1], [0], [0], [0, 0, 1, 0], [], []>} : vector<8x8xbf16>, vector<8x8xbf16>, vector<8x8xf32> -> vector<8x8xf32>
    %cst_35 = arith.constant dense<0xFF800000> : vector<8xf32>
    %96 = vector.multi_reduction <maximumf>, %95, %cst_35 [1] : vector<8x8xf32> to vector<8xf32>
    %97 = vector.shape_cast %96 : vector<8xf32> to vector<8x1xf32>
    %98 = vector.broadcast %97 : vector<8x1xf32> to vector<8x8xf32>
    %99 = arith.subf %95, %98 : vector<8x8xf32>
    %100 = math.exp %99 : vector<8x8xf32>
    %cst_36 = arith.constant dense<0.000000e+00> : vector<8xf32>
    %101 = vector.multi_reduction <add>, %100, %cst_36 [1] : vector<8x8xf32> to vector<8xf32>
    %102 = vector.shape_cast %101 : vector<8xf32> to vector<8x1xf32>
    %103 = tpu.reciprocal %102 : vector<8x1xf32> -> vector<8x1xf32>
    %104 = vector.broadcast %103 : vector<8x1xf32> to vector<8x8xf32>
    %105 = arith.mulf %100, %104 : vector<8x8xf32>
    %106 = arith.truncf %105 : vector<8x8xf32> to vector<8x8xbf16>
    %cst_37 = arith.constant dense<0.000000e+00> : vector<8x8xf32>
    %107 = tpu.matmul %106, %94, %cst_37 {dimension_numbers = #tpu.dot_dimension_numbers<[1], [0], [0], [1], [0, 0, 1, 1], [], []>} : vector<8x8xbf16>, vector<8x8xbf16>, vector<8x8xf32> -> vector<8x8xf32>
    %108 = arith.truncf %107 : vector<8x8xf32> to vector<8x8xbf16>
    %109 = vector.extract_strided_slice %2 {offsets = [24, 0], sizes = [8, 32], strides = [1, 1]} : vector<32x32xbf16> to vector<8x32xbf16>
    %cst_38 = arith.constant dense<0.000000e+00> : vector<8x32xf32>
    %110 = tpu.matmul %108, %109, %cst_38 {dimension_numbers = #tpu.dot_dimension_numbers<[1], [0], [0], [1], [0, 0, 1, 1], [], []>} : vector<8x8xbf16>, vector<8x32xbf16>, vector<8x32xf32> -> vector<8x32xf32>
    %111 = arith.addf %91, %110 : vector<8x32xf32>
    %112 = vector.broadcast %3 : vector<1x32xf32> to vector<8x32xf32>
    %113 = arith.addf %111, %112 : vector<8x32xf32>
    %c0_39 = arith.constant 0 : index
    %c0_40 = arith.constant 0 : index
    %c0_41 = arith.constant 0 : index
    %114 = vector.load %arg8[%c0_39, %c0_40, %c0_41] : memref<2x8x32xf32, #tpu.memory_space<vmem>>, vector<1x8x32xf32>
    %115 = vector.shape_cast %114 : vector<1x8x32xf32> to vector<8x32xf32>
    %116 = vector.shape_cast %113 : vector<8x32xf32> to vector<1x8x32xf32>
    tpu.vector_store %arg8[%c0_39, %c0_40, %c0_41], %116 {strides = array<i32>} : memref<2x8x32xf32, #tpu.memory_space<vmem>>, vector<1x8x32xf32>,
    %117 = vector.extract_strided_slice %15 {offsets = [8, 0], sizes = [8, 32], strides = [1, 1]} : vector<16x32xbf16> to vector<8x32xbf16>
    %118 = vector.extract_strided_slice %21 {offsets = [8, 0], sizes = [8, 32], strides = [1, 1]} : vector<16x32xbf16> to vector<8x32xbf16>
    %119 = vector.extract_strided_slice %27 {offsets = [8, 0], sizes = [8, 32], strides = [1, 1]} : vector<16x32xbf16> to vector<8x32xbf16>
    %cst_42 = arith.constant 0.000000e+00 : f32
    %120 = vector.broadcast %cst_42 : f32 to vector<8x32xf32>
    %121 = vector.extract_strided_slice %117 {offsets = [0, 0], sizes = [8, 8], strides = [1, 1]} : vector<8x32xbf16> to vector<8x8xbf16>
    %122 = vector.extract_strided_slice %118 {offsets = [0, 0], sizes = [8, 8], strides = [1, 1]} : vector<8x32xbf16> to vector<8x8xbf16>
    %123 = vector.extract_strided_slice %119 {offsets = [0, 0], sizes = [8, 8], strides = [1, 1]} : vector<8x32xbf16> to vector<8x8xbf16>
    %cst_43 = arith.constant dense<0.000000e+00> : vector<8x8xf32>
    %124 = tpu.matmul %121, %122, %cst_43 {dimension_numbers = #tpu.dot_dimension_numbers<[1], [1], [0], [0], [0, 0, 1, 0], [], []>} : vector<8x8xbf16>, vector<8x8xbf16>, vector<8x8xf32> -> vector<8x8xf32>
    %cst_44 = arith.constant dense<0xFF800000> : vector<8xf32>
    %125 = vector.multi_reduction <maximumf>, %124, %cst_44 [1] : vector<8x8xf32> to vector<8xf32>
    %126 = vector.shape_cast %125 : vector<8xf32> to vector<8x1xf32>
    %127 = vector.broadcast %126 : vector<8x1xf32> to vector<8x8xf32>
    %128 = arith.subf %124, %127 : vector<8x8xf32>
    %129 = math.exp %128 : vector<8x8xf32>
    %cst_45 = arith.constant dense<0.000000e+00> : vector<8xf32>
    %130 = vector.multi_reduction <add>, %129, %cst_45 [1] : vector<8x8xf32> to vector<8xf32>
    %131 = vector.shape_cast %130 : vector<8xf32> to vector<8x1xf32>
    %132 = tpu.reciprocal %131 : vector<8x1xf32> -> vector<8x1xf32>
    %133 = vector.broadcast %132 : vector<8x1xf32> to vector<8x8xf32>
    %134 = arith.mulf %129, %133 : vector<8x8xf32>
    %135 = arith.truncf %134 : vector<8x8xf32> to vector<8x8xbf16>
    %cst_46 = arith.constant dense<0.000000e+00> : vector<8x8xf32>
    %136 = tpu.matmul %135, %123, %cst_46 {dimension_numbers = #tpu.dot_dimension_numbers<[1], [0], [0], [1], [0, 0, 1, 1], [], []>} : vector<8x8xbf16>, vector<8x8xbf16>, vector<8x8xf32> -> vector<8x8xf32>
    %137 = arith.truncf %136 : vector<8x8xf32> to vector<8x8xbf16>
    %138 = vector.extract_strided_slice %2 {offsets = [0, 0], sizes = [8, 32], strides = [1, 1]} : vector<32x32xbf16> to vector<8x32xbf16>
    %cst_47 = arith.constant dense<0.000000e+00> : vector<8x32xf32>
    %139 = tpu.matmul %137, %138, %cst_47 {dimension_numbers = #tpu.dot_dimension_numbers<[1], [0], [0], [1], [0, 0, 1, 1], [], []>} : vector<8x8xbf16>, vector<8x32xbf16>, vector<8x32xf32> -> vector<8x32xf32>
    %140 = arith.addf %120, %139 : vector<8x32xf32>
    %141 = vector.extract_strided_slice %117 {offsets = [0, 8], sizes = [8, 8], strides = [1, 1]} : vector<8x32xbf16> to vector<8x8xbf16>
    %142 = vector.extract_strided_slice %118 {offsets = [0, 8], sizes = [8, 8], strides = [1, 1]} : vector<8x32xbf16> to vector<8x8xbf16>
    %143 = vector.extract_strided_slice %119 {offsets = [0, 8], sizes = [8, 8], strides = [1, 1]} : vector<8x32xbf16> to vector<8x8xbf16>
    %cst_48 = arith.constant dense<0.000000e+00> : vector<8x8xf32>
    %144 = tpu.matmul %141, %142, %cst_48 {dimension_numbers = #tpu.dot_dimension_numbers<[1], [1], [0], [0], [0, 0, 1, 0], [], []>} : vector<8x8xbf16>, vector<8x8xbf16>, vector<8x8xf32> -> vector<8x8xf32>
    %cst_49 = arith.constant dense<0xFF800000> : vector<8xf32>
    %145 = vector.multi_reduction <maximumf>, %144, %cst_49 [1] : vector<8x8xf32> to vector<8xf32>
    %146 = vector.shape_cast %145 : vector<8xf32> to vector<8x1xf32>
    %147 = vector.broadcast %146 : vector<8x1xf32> to vector<8x8xf32>
    %148 = arith.subf %144, %147 : vector<8x8xf32>
    %149 = math.exp %148 : vector<8x8xf32>
    %cst_50 = arith.constant dense<0.000000e+00> : vector<8xf32>
    %150 = vector.multi_reduction <add>, %149, %cst_50 [1] : vector<8x8xf32> to vector<8xf32>
    %151 = vector.shape_cast %150 : vector<8xf32> to vector<8x1xf32>
    %152 = tpu.reciprocal %151 : vector<8x1xf32> -> vector<8x1xf32>
    %153 = vector.broadcast %152 : vector<8x1xf32> to vector<8x8xf32>
    %154 = arith.mulf %149, %153 : vector<8x8xf32>
    %155 = arith.truncf %154 : vector<8x8xf32> to vector<8x8xbf16>
    %cst_51 = arith.constant dense<0.000000e+00> : vector<8x8xf32>
    %156 = tpu.matmul %155, %143, %cst_51 {dimension_numbers = #tpu.dot_dimension_numbers<[1], [0], [0], [1], [0, 0, 1, 1], [], []>} : vector<8x8xbf16>, vector<8x8xbf16>, vector<8x8xf32> -> vector<8x8xf32>
    %157 = arith.truncf %156 : vector<8x8xf32> to vector<8x8xbf16>
    %158 = vector.extract_strided_slice %2 {offsets = [8, 0], sizes = [8, 32], strides = [1, 1]} : vector<32x32xbf16> to vector<8x32xbf16>
    %cst_52 = arith.constant dense<0.000000e+00> : vector<8x32xf32>
    %159 = tpu.matmul %157, %158, %cst_52 {dimension_numbers = #tpu.dot_dimension_numbers<[1], [0], [0], [1], [0, 0, 1, 1], [], []>} : vector<8x8xbf16>, vector<8x32xbf16>, vector<8x32xf32> -> vector<8x32xf32>
    %160 = arith.addf %140, %159 : vector<8x32xf32>
    %161 = vector.extract_strided_slice %117 {offsets = [0, 16], sizes = [8, 8], strides = [1, 1]} : vector<8x32xbf16> to vector<8x8xbf16>
    %162 = vector.extract_strided_slice %118 {offsets = [0, 16], sizes = [8, 8], strides = [1, 1]} : vector<8x32xbf16> to vector<8x8xbf16>
    %163 = vector.extract_strided_slice %119 {offsets = [0, 16], sizes = [8, 8], strides = [1, 1]} : vector<8x32xbf16> to vector<8x8xbf16>
    %cst_53 = arith.constant dense<0.000000e+00> : vector<8x8xf32>
    %164 = tpu.matmul %161, %162, %cst_53 {dimension_numbers = #tpu.dot_dimension_numbers<[1], [1], [0], [0], [0, 0, 1, 0], [], []>} : vector<8x8xbf16>, vector<8x8xbf16>, vector<8x8xf32> -> vector<8x8xf32>
    %cst_54 = arith.constant dense<0xFF800000> : vector<8xf32>
    %165 = vector.multi_reduction <maximumf>, %164, %cst_54 [1] : vector<8x8xf32> to vector<8xf32>
    %166 = vector.shape_cast %165 : vector<8xf32> to vector<8x1xf32>
    %167 = vector.broadcast %166 : vector<8x1xf32> to vector<8x8xf32>
    %168 = arith.subf %164, %167 : vector<8x8xf32>
    %169 = math.exp %168 : vector<8x8xf32>
    %cst_55 = arith.constant dense<0.000000e+00> : vector<8xf32>
    %170 = vector.multi_reduction <add>, %169, %cst_55 [1] : vector<8x8xf32> to vector<8xf32>
    %171 = vector.shape_cast %170 : vector<8xf32> to vector<8x1xf32>
    %172 = tpu.reciprocal %171 : vector<8x1xf32> -> vector<8x1xf32>
    %173 = vector.broadcast %172 : vector<8x1xf32> to vector<8x8xf32>
    %174 = arith.mulf %169, %173 : vector<8x8xf32>
    %175 = arith.truncf %174 : vector<8x8xf32> to vector<8x8xbf16>
    %cst_56 = arith.constant dense<0.000000e+00> : vector<8x8xf32>
    %176 = tpu.matmul %175, %163, %cst_56 {dimension_numbers = #tpu.dot_dimension_numbers<[1], [0], [0], [1], [0, 0, 1, 1], [], []>} : vector<8x8xbf16>, vector<8x8xbf16>, vector<8x8xf32> -> vector<8x8xf32>
    %177 = arith.truncf %176 : vector<8x8xf32> to vector<8x8xbf16>
    %178 = vector.extract_strided_slice %2 {offsets = [16, 0], sizes = [8, 32], strides = [1, 1]} : vector<32x32xbf16> to vector<8x32xbf16>
    %cst_57 = arith.constant dense<0.000000e+00> : vector<8x32xf32>
    %179 = tpu.matmul %177, %178, %cst_57 {dimension_numbers = #tpu.dot_dimension_numbers<[1], [0], [0], [1], [0, 0, 1, 1], [], []>} : vector<8x8xbf16>, vector<8x32xbf16>, vector<8x32xf32> -> vector<8x32xf32>
    %180 = arith.addf %160, %179 : vector<8x32xf32>
    %181 = vector.extract_strided_slice %117 {offsets = [0, 24], sizes = [8, 8], strides = [1, 1]} : vector<8x32xbf16> to vector<8x8xbf16>
    %182 = vector.extract_strided_slice %118 {offsets = [0, 24], sizes = [8, 8], strides = [1, 1]} : vector<8x32xbf16> to vector<8x8xbf16>
    %183 = vector.extract_strided_slice %119 {offsets = [0, 24], sizes = [8, 8], strides = [1, 1]} : vector<8x32xbf16> to vector<8x8xbf16>
    %cst_58 = arith.constant dense<0.000000e+00> : vector<8x8xf32>
    %184 = tpu.matmul %181, %182, %cst_58 {dimension_numbers = #tpu.dot_dimension_numbers<[1], [1], [0], [0], [0, 0, 1, 0], [], []>} : vector<8x8xbf16>, vector<8x8xbf16>, vector<8x8xf32> -> vector<8x8xf32>
    %cst_59 = arith.constant dense<0xFF800000> : vector<8xf32>
    %185 = vector.multi_reduction <maximumf>, %184, %cst_59 [1] : vector<8x8xf32> to vector<8xf32>
    %186 = vector.shape_cast %185 : vector<8xf32> to vector<8x1xf32>
    %187 = vector.broadcast %186 : vector<8x1xf32> to vector<8x8xf32>
    %188 = arith.subf %184, %187 : vector<8x8xf32>
    %189 = math.exp %188 : vector<8x8xf32>
    %cst_60 = arith.constant dense<0.000000e+00> : vector<8xf32>
    %190 = vector.multi_reduction <add>, %189, %cst_60 [1] : vector<8x8xf32> to vector<8xf32>
    %191 = vector.shape_cast %190 : vector<8xf32> to vector<8x1xf32>
    %192 = tpu.reciprocal %191 : vector<8x1xf32> -> vector<8x1xf32>
    %193 = vector.broadcast %192 : vector<8x1xf32> to vector<8x8xf32>
    %194 = arith.mulf %189, %193 : vector<8x8xf32>
    %195 = arith.truncf %194 : vector<8x8xf32> to vector<8x8xbf16>
    %cst_61 = arith.constant dense<0.000000e+00> : vector<8x8xf32>
    %196 = tpu.matmul %195, %183, %cst_61 {dimension_numbers = #tpu.dot_dimension_numbers<[1], [0], [0], [1], [0, 0, 1, 1], [], []>} : vector<8x8xbf16>, vector<8x8xbf16>, vector<8x8xf32> -> vector<8x8xf32>
    %197 = arith.truncf %196 : vector<8x8xf32> to vector<8x8xbf16>
    %198 = vector.extract_strided_slice %2 {offsets = [24, 0], sizes = [8, 32], strides = [1, 1]} : vector<32x32xbf16> to vector<8x32xbf16>
    %cst_62 = arith.constant dense<0.000000e+00> : vector<8x32xf32>
    %199 = tpu.matmul %197, %198, %cst_62 {dimension_numbers = #tpu.dot_dimension_numbers<[1], [0], [0], [1], [0, 0, 1, 1], [], []>} : vector<8x8xbf16>, vector<8x32xbf16>, vector<8x32xf32> -> vector<8x32xf32>
    %200 = arith.addf %180, %199 : vector<8x32xf32>
    %201 = vector.broadcast %3 : vector<1x32xf32> to vector<8x32xf32>
    %202 = arith.addf %200, %201 : vector<8x32xf32>
    %c1 = arith.constant 1 : index
    %c0_63 = arith.constant 0 : index
    %c0_64 = arith.constant 0 : index
    %203 = vector.load %arg8[%c1, %c0_63, %c0_64] : memref<2x8x32xf32, #tpu.memory_space<vmem>>, vector<1x8x32xf32>
    %204 = vector.shape_cast %203 : vector<1x8x32xf32> to vector<8x32xf32>
    %205 = vector.shape_cast %202 : vector<8x32xf32> to vector<1x8x32xf32>
    tpu.vector_store %arg8[%c1, %c0_63, %c0_64], %205 {strides = array<i32>} : memref<2x8x32xf32, #tpu.memory_space<vmem>>, vector<1x8x32xf32>,
    return
  }
  func.func @transform_0(%arg0: i32) -> (i32, i32, i32) {
    %c0_i32 = arith.constant 0 : i32
    %c0_i32_0 = arith.constant 0 : i32
    %c0_i32_1 = arith.constant 0 : i32
    return %arg0, %c0_i32, %c0_i32_0 : i32, i32, i32
  }
  func.func @transform_1(%arg0: i32) -> (i32, i32, i32) {
    %c0_i32 = arith.constant 0 : i32
    %c0_i32_0 = arith.constant 0 : i32
    %c0_i32_1 = arith.constant 0 : i32
    return %arg0, %c0_i32, %c0_i32_0 : i32, i32, i32
  }
  func.func @transform_2(%arg0: i32) -> (i32, i32, i32) {
    %c0_i32 = arith.constant 0 : i32
    %c0_i32_0 = arith.constant 0 : i32
    %c0_i32_1 = arith.constant 0 : i32
    return %arg0, %c0_i32, %c0_i32_0 : i32, i32, i32
  }
  func.func @transform_3(%arg0: i32) -> (i32, i32) {
    %c0_i32 = arith.constant 0 : i32
    %c0_i32_0 = arith.constant 0 : i32
    %c0_i32_1 = arith.constant 0 : i32
    return %c0_i32, %c0_i32_0 : i32, i32
  }
  func.func @transform_4(%arg0: i32) -> (i32, i32) {
    %c0_i32 = arith.constant 0 : i32
    %c0_i32_0 = arith.constant 0 : i32
    %c0_i32_1 = arith.constant 0 : i32
    return %c0_i32, %c0_i32_0 : i32, i32
  }
  func.func @transform_5(%arg0: i32) -> (i32, i32) {
    %c0_i32 = arith.constant 0 : i32
    %c0_i32_0 = arith.constant 0 : i32
    %c0_i32_1 = arith.constant 0 : i32
    return %c0_i32, %c0_i32_0 : i32, i32
  }
  func.func @transform_6(%arg0: i32) -> (i32, i32) {
    %c0_i32 = arith.constant 0 : i32
    %c0_i32_0 = arith.constant 0 : i32
    %c0_i32_1 = arith.constant 0 : i32
    return %c0_i32, %c0_i32_0 : i32, i32
  }
  func.func @transform_7(%arg0: i32) -> (i32, i32, i32) {
    %c0_i32 = arith.constant 0 : i32
    %c0_i32_0 = arith.constant 0 : i32
    %c0_i32_1 = arith.constant 0 : i32
    return %arg0, %c0_i32, %c0_i32_0 : i32, i32, i32
  }
}

</mosaic_0001>

<bundles_post_ra>
// kernel: tpu_custom_call.1
= control target key start
LH: loop header
LB: loop body
LE: loop exit
PB: predicated region body
PF: predicated region fallthrough
CT: control target
= control target key end

     0   :  { %12 = vsyncpa [#allocation3], 0  ;;  %s2389_s0 = inlined_call_operand.hbm [shape: bf16[2,8,32], index: 0, kind: input, shape index: {}]   ;;  %s2390_s1 = inlined_call_operand.hbm [shape: bf16[2,8,32], index: 1, kind: input, shape index: {}]   ;;  %s2391_s2 = inlined_call_operand.hbm [shape: bf16[2,8,32], index: 2, kind: input, shape index: {}]   ;;  %s2392_s3 = inlined_call_operand.hbm [shape: bf16[32,96], index: 3, kind: input, shape index: {}]   ;;  %s2393_s4 = inlined_call_operand.vmem [shape: f32[1,96], index: 4, kind: input, shape index: {}]   ;;  %s2394_s5 = inlined_call_operand.vmem [shape: bf16[32,32], index: 5, kind: input, shape index: {}]   ;;  %s2395_s6 = inlined_call_operand.vmem [shape: f32[1,32], index: 6, kind: input, shape index: {}]   ;;  %s2396_s7 = inlined_call_operand.hbm [shape: f32[2,8,32], index: 7, kind: output, shape index: {}]  }
   0x1   :  { %13 = vsyncpa [#allocation6], 0 }
   0x2   :  { %14 = vsyncpa [#allocation9], 0 }
   0x3   :  { %15 = vsyncpa [#allocation4], 0  ;;  %s1989_s24 = smov [#allocation5]   ;;  %s1990_s26 = smov [#allocation2]  }
   0x4   :  { %s33_s25 = sshll.u32 %s1989_s24, 4  ;;  %s21_s27 = sshll.u32 %s1990_s26, 4  ;;  %s34_s25 = int_to_ptr.vmem [resolvable:$true] %s33_s25  ;;  %s2044_s27 = int_to_ptr.vmem [resolvable:$true] %s21_s27 }
   0x5   :  { %s1871_s30 = scalar_lea.hbm %s2390_s1, 128 }
   0x6   :  { %p1872_p0 = scmp.ne.s32.totalorder %s2390_s1, %s1871_s30  ;;  %p1875_p1 = scmp.lt.u32.totalorder %s1871_s30, %s2390_s1 }
   0x8   :  { %p1877_p2 = pnand %p1875_p1, %p1872_p0 }
   0xa   :  { %1880 = shalt.err (!%p1877_p2)
}
   0xb   :  { %s1881_s12 = scalar_lea.vmem %s34_s25, 128  ;;  %p1886_p4 = scmp.lt.s32.totalorder %s34_s25, %s34_s25 }
   0xc   :  { %p1882_p3 = scmp.ne.s32.totalorder %s34_s25, %s1881_s12  ;;  %p1887_p5 = scmp.lt.s32.totalorder %s1881_s12, %s1881_s12 }
   0xe   :  { %p1888_p6 = por %p1887_p5, %p1886_p4 }
  0x10   :  { %p1889_p7 = pnand %p1888_p6, %p1882_p3 }
  0x12   :  { %1892 = shalt.err (!%p1889_p7)
}
  0x13   :  { %s1991_s13 = smov 64   ;;  %s1992_s14 = smov 4  }
  0x14   :  { %39 = dma.hbm_to_vmem [thread:$0]  %s2390_s1, 128, %s34_s25, [#allocation6], %s1991_s13, %s1991_s13, %s1992_s14  }
  0x15   :  { %s1893_s19 = scalar_lea.hbm %s2389_s0, 128 }
  0x16   :  { %p1894_p8 = scmp.ne.s32.totalorder %s2389_s0, %s1893_s19  ;;  %p1897_p9 = scmp.lt.u32.totalorder %s1893_s19, %s2389_s0 }
  0x18   :  { %p1899_p10 = pnand %p1897_p9, %p1894_p8 }
  0x1a   :  { %1902 = shalt.err (!%p1899_p10)
}
  0x1b   :  { %s1903_s24 = scalar_lea.vmem %s2044_s27, 128  ;;  %p1908_p12 = scmp.lt.s32.totalorder %s2044_s27, %s2044_s27 }
  0x1c   :  { %p1904_p11 = scmp.ne.s32.totalorder %s2044_s27, %s1903_s24  ;;  %p1909_p13 = scmp.lt.s32.totalorder %s1903_s24, %s1903_s24 }
  0x1e   :  { %p1910_p0 = por %p1909_p13, %p1908_p12 }
  0x20   :  { %p1911_p1 = pnand %p1910_p0, %p1904_p11 }
  0x22   :  { %1914 = shalt.err (!%p1911_p1)
}
  0x23   :  { %27 = dma.hbm_to_vmem [thread:$0]  %s2389_s0, 128, %s2044_s27, [#allocation3], %s1991_s13, %s1991_s13, %s1992_s14  }
  0x24   :  { %s1993_s26 = smov [#allocation7]   ;;  %s1994_s29 = smov [#allocation8]  }
  0x25   :  { %s45_s28 = sshll.u32 %s1993_s26, 4  ;;  %s57_s30 = sshll.u32 %s1994_s29, 4  ;;  %s46_s28 = int_to_ptr.vmem [resolvable:$true] %s45_s28  ;;  %s2081_s30 = int_to_ptr.vmem [resolvable:$true] %s57_s30 }
  0x26   :  { %s1915_s10 = scalar_lea.hbm %s2391_s2, 128 }
  0x27   :  { %p1916_p2 = scmp.ne.s32.totalorder %s2391_s2, %s1915_s10  ;;  %p1919_p3 = scmp.lt.u32.totalorder %s1915_s10, %s2391_s2 }
  0x29   :  { %p1921_p4 = pnand %p1919_p3, %p1916_p2 }
  0x2b   :  { %1924 = shalt.err (!%p1921_p4)
}
  0x2c   :  { %s1925_s0 = scalar_lea.vmem %s46_s28, 128  ;;  %p1930_p6 = scmp.lt.s32.totalorder %s46_s28, %s46_s28 }
  0x2d   :  { %p1926_p5 = scmp.ne.s32.totalorder %s46_s28, %s1925_s0  ;;  %p1931_p7 = scmp.lt.s32.totalorder %s1925_s0, %s1925_s0 }
  0x2f   :  { %p1932_p8 = por %p1931_p7, %p1930_p6 }
  0x31   :  { %p1933_p9 = pnand %p1932_p8, %p1926_p5 }
  0x33   :  { %1936 = shalt.err (!%p1933_p9)
}
  0x34   :  { %51 = dma.hbm_to_vmem [thread:$0]  %s2391_s2, 128, %s46_s28, [#allocation6], %s1991_s13, %s1991_s13, %s1992_s14  }
  0x35   :  { %s1937_s20 = scalar_lea.hbm %s2392_s3, 256 }
  0x36   :  { %p1938_p10 = scmp.ne.s32.totalorder %s2392_s3, %s1937_s20  ;;  %p1941_p11 = scmp.lt.u32.totalorder %s1937_s20, %s2392_s3 }
  0x38   :  { %p1943_p12 = pnand %p1941_p11, %p1938_p10 }
  0x3a   :  { %1946 = shalt.err (!%p1943_p12)
}
  0x3b   :  { %s1947_s1 = scalar_lea.vmem %s2081_s30, 256  ;;  %p1952_p0 = scmp.lt.s32.totalorder %s2081_s30, %s2081_s30 }
  0x3c   :  { %p1948_p13 = scmp.ne.s32.totalorder %s2081_s30, %s1947_s1  ;;  %p1953_p1 = scmp.lt.s32.totalorder %s1947_s1, %s1947_s1 }
  0x3e   :  { %p1954_p2 = por %p1953_p1, %p1952_p0 }
  0x40   :  { %p1955_p3 = pnand %p1954_p2, %p1948_p13 }
  0x42   :  { %1958 = shalt.err (!%p1955_p3)
}
  0x43   :  { %63 = dma.hbm_to_vmem [thread:$0]  %s2392_s3, 256, %s2081_s30, [#allocation9], %s1991_s13, %s1991_s13, %s1992_s14  }
  0x44   :  { %1981 = dma.done.wait [#allocation3], 128  }
  0x45   :  { %1982 = vsyncadd [#allocation3], 4294967168 }
  0x46   :  { %1983 = dma.done.wait [#allocation6], 256  }
  0x47   :  { %1984 = vsyncadd [#allocation6], 4294967040 }
  0x48   :  { %1985 = dma.done.wait [#allocation9], 256  }
  0x49   :  { %1986 = vsyncadd [#allocation9], 4294967040  ;;  %v1995_v0 = vmov 0.0   ;;  %vm1996_vm0 = vmmov 0   ;;  %v1834_v1 = vld [vmem:[#allocation8] sm:$0xff]   ;;  %s1997_s3 = smov 96  }
  0x4a   :  { %1659 = vmatprep.subr.bf16.mxu1 %v1995_v0  ;;  %1651 = vmatprep.subr.bf16.mxu0 %v1995_v0  ;;  %v1835_v2 = vld [vmem:[#allocation8 + $0x8] sm:$0xff]   ;;  %v2128_v3 = vld [vmem:[%s2393_s4] ss:$0 sm:$0xff]  ;;  %vm122_vm1 = vcmask 261120   ;;  %v1836_v7 = vld [vmem:[#allocation5] sm:$0xff]   ;;  %s1998_s4 = smov 120  }
  0x4b   :  { %1663 = vmatprep.mubr.msk.bf16.mxu1 %vm1996_vm0, %v1995_v0  ;;  %1655 = vmatprep.mubr.msk.bf16.mxu0 %vm1996_vm0, %v1995_v0  ;;  %v1837_v4 = vld [vmem:[#allocation2] sm:$0xff]   ;;  %vm286_vm2 = vcmask 64512   ;;  %v1838_v29 = vld [vmem:[#allocation7] sm:$0xff]   ;;  %s1999_s28 = smov 112   ;;  %vm348_vm3 = vcmask 1043456   ;;  %s2000_s9 = smov 104  }
  0x4c   :  { %173 = vrot.lane.b32.xlu0 %v1834_v1, %s1997_s3  ;;  %1652 = vmatpush3.bf16.msra.mxu0 %v1834_v1  ;;  %v89_v63 = vld [vmem:[%s2394_s5 + $0x4] sm:$0xf] }
  0x4d   :  { %1653 = vmatprep.subr.bf16.mxu0 %v1995_v0  ;;  %179 = vrot.lane.b32.xlu1 %v2128_v3, %s1997_s3 }
  0x50   :  { %175 = vrot.lane.b32.xlu0 %v1835_v2, %s1997_s3  ;;  %1654 = vmatpush3.bf16.msra.mxu0 %v1835_v2 }
  0x51   :  { %1667 = vmatprep.subr.bf16.mxu0 %v1995_v0 }
  0x53   :  { %1656 = vmatmul.mubr.msk.bf16.vlgmr.msra.gmra.mrb[0].mxu0 %vm122_vm1, %v1837_v4 }
  0x54   :  { %1671 = vmatprep.mubr.msk.bf16.mxu0 %vm1996_vm0, %v1995_v0 }
  0xbe   :  { %v174_v5 = vpop.permute.xlu0 %173 }
  0xbf   :  { %1660 = vmatpush3.bf16.msra.mxu1 %v174_v5  ;;  %v180_v15 = vpop.permute.xlu1 %179 }
  0xc0   :  { %1661 = vmatprep.subr.bf16.mxu1 %v1995_v0 }
  0xc2   :  { %v176_v6 = vpop.permute.xlu0 %175 }
  0xc3   :  { %1662 = vmatpush3.bf16.msra.mxu1 %v176_v6  ;;  %v88_v6 = vld [vmem:[%s2394_s5] sm:$0xf] }
  0xc4   :  { %1675 = vmatprep.subr.bf16.mxu1 %v1995_v0 }
  0xc6   :  { %1664 = vmatmul.mubr.msk.bf16.vlgmr.msra.gmra.mrb[0].mxu1 %vm122_vm1, %v1836_v7 }
  0xc7   :  { %1677 = vmatprep.mubr.msk.bf16.mxu1 %vm1996_vm0, %v1995_v0 }
 0x126   :  { %v160_v8 = vpop.f32.mrb[0].mxu0 }
 0x127   :  { %v161_v9 = vadd.f32 %v2128_v3, %v160_v8  ;;  %v1657_v10 = vpop.f32.mrb[1].mxu0 }
 0x128   :  { %v163_v11 = vpop.f32.mrb[2].mxu0 }
 0x129   :  { %v164_v12 = vadd.f32 %v2128_v3, %v163_v11  ;;  %v1658_v13 = vpop.f32.mrb[3].mxu0 }
 0x12b   :  { %v2142_v14 = vpack.c.bf16 %v164_v12, %v161_v9  ;;  %v2203_v9 = vsel %vm348_vm3, %v88_v6, 0 }
 0x12d   :  { %394 = vrot.lane.b32.xlu0 %v2142_v14, %s1998_s4 }
 0x131   :  { %234 = vrot.lane.b32.xlu0 %v1835_v2, %s1991_s13 }
 0x199   :  { %v219_v16 = vpop.f32.mrb[0].mxu1 }
 0x19a   :  { %v1665_v17 = vpop.f32.mrb[1].mxu1  ;;  %v220_v19 = vadd.f32 %v219_v16, %v180_v15 }
 0x19b   :  { %v222_v18 = vpop.f32.mrb[2].mxu1 }
 0x19c   :  { %v223_v20 = vadd.f32 %v222_v18, %v180_v15  ;;  %v1666_v21 = vpop.f32.mrb[3].mxu1 }
 0x19e   :  { %v2147_v22 = vpack.c.bf16 %v223_v20, %v220_v19 }
 0x19f   :  { %v395_v26 = vpop.permute.xlu0 %394 }
 0x1a0   :  { %397 = vrot.lane.b32.xlu1 %v2147_v22, %s1998_s4  ;;  %v291_v23 = vsel %vm286_vm2, %v2147_v22, 0 }
 0x1a1   :  { %1676 = vmatpush3.bf16.xpose.msra.mxu1 %v291_v23 }
 0x1a2   :  { %1687 = vmatprep.subr.bf16.mxu1 %v1995_v0 }
 0x1a3   :  { %v235_v28 = vpop.permute.xlu0 %234 }
 0x1a4   :  { %232 = vrot.lane.b32.xlu1 %v1834_v1, %s1991_s13  ;;  %v2193_v1 = vsel %vm348_vm3, %v89_v63, 0 }
 0x1a8   :  { %1678 = vmatmul.mubr.msk.bf16.vlgmr.msra.gmra.mrb[4].mxu1 %vm286_vm2, %v2142_v14 }
 0x1a9   :  { %1689 = vmatprep.mubr.msk.bf16.mxu1 %vm1996_vm0, %v1995_v0 }
 0x212   :  { %v398_v24 = vpop.permute.xlu1 %397 }
 0x213   :  { %v403_v25 = vsel %vm286_vm2, %v398_v24, 0 }
 0x214   :  { %1688 = vmatpush3.bf16.xpose.msra.mxu1 %v403_v25 }
 0x215   :  { %1699 = vmatprep.subr.bf16.mxu1 %v1995_v0 }
 0x216   :  { %v233_v27 = vpop.permute.xlu1 %232 }
 0x217   :  { %1668 = vmatpush3.bf16.msra.mxu0 %v233_v27 }
 0x218   :  { %1669 = vmatprep.subr.bf16.mxu0 %v1995_v0 }
 0x21b   :  { %1690 = vmatmul.mubr.msk.bf16.vlgmr.msra.gmra.mrb[8].mxu1 %vm286_vm2, %v395_v26  ;;  %1670 = vmatpush3.bf16.msra.mxu0 %v235_v28 }
 0x21c   :  { %1681 = vmatprep.subr.bf16.mxu0 %v1995_v0  ;;  %1701 = vmatprep.mubr.msk.bf16.mxu1 %vm1996_vm0, %v1995_v0 }
 0x21d   :  { %1700 = vmatpush3.bf16.msra.mxu1 %v2193_v1 }
 0x21e   :  { %1672 = vmatmul.mubr.msk.bf16.vlgmr.msra.gmra.mrb[4].mxu0 %vm122_vm1, %v1838_v29  ;;  %1711 = vmatprep.subr.bf16.mxu1 %v1995_v0 }
 0x21f   :  { %1683 = vmatprep.mubr.msk.bf16.mxu0 %vm1996_vm0, %v1995_v0 }
 0x27b   :  { %v327_v30 = vpop.f32.mrb[4].mxu1 }
 0x27c   :  { %v1679_v31 = vpop.f32.mrb[5].mxu1  ;;  %v333_v32 = vsel %vm286_vm2, %v327_v30, -inf }
 0x27d   :  { %334 = vmax.xlane.f32.xlu1 %v333_v32  ;;  %v330_v33 = vpop.f32.mrb[6].mxu1 }
 0x27e   :  { %v1680_v34 = vpop.f32.mrb[7].mxu1 }
 0x2ee   :  { %v439_v35 = vpop.f32.mrb[8].mxu1 }
 0x2ef   :  { %v1691_v36 = vpop.f32.mrb[9].mxu1  ;;  %v445_v37 = vsel %vm286_vm2, %v439_v35, -inf }
 0x2f0   :  { %446 = vmax.xlane.f32.xlu0 %v445_v37  ;;  %v442_v38 = vpop.f32.mrb[10].mxu1 }
 0x2f1   :  { %v1692_v39 = vpop.f32.mrb[11].mxu1  ;;  %v278_v43 = vpop.f32.mrb[4].mxu0 }
 0x2f2   :  { %v1673_v44 = vpop.f32.mrb[5].mxu0 }
 0x2f3   :  { %v281_v47 = vpop.f32.mrb[6].mxu0 }
 0x2f4   :  { %v1674_v48 = vpop.f32.mrb[7].mxu0 }
 0x306   :  { %238 = vrot.lane.b32.xlu0 %v2128_v3, %s1991_s13 }
 0x30a   :  { %v335_v40 = vpop.xlane.xlu1 %334  ;;  %601 = vrot.lane.b32.xlu0 %v2147_v22, %s1999_s28 }
 0x30b   :  { %v336_v41 = vsub.f32 %v327_v30, %v335_v40 }
 0x30d   :  { %v337_v42 = vmul.f32 1.442695, %v336_v41 }
 0x30e   :  { %599 = vrot.lane.b32.xlu0 %v2142_v14, %s1999_s28 }
 0x30f   :  { %1839 = vpow2.f32 %v337_v42 }
 0x319   :  { %v1840_v45 = vpop.eup %1839 }
 0x31a   :  { %v339_v46 = vsel %vm286_vm2, %v1840_v45, 0.0 }
 0x31b   :  { %340 = vadd.xlane.f32.xlu1 %v339_v46 }
 0x37d   :  { %v447_v49 = vpop.xlane.xlu0 %446 }
 0x37e   :  { %v448_v50 = vsub.f32 %v439_v35, %v447_v49 }
 0x380   :  { %v449_v51 = vmul.f32 1.442695, %v448_v50 }
 0x381   :  { %v239_v52 = vpop.permute.xlu0 %238 }
 0x382   :  { %1841 = vpow2.f32 %v449_v51  ;;  %v279_v53 = vadd.f32 %v278_v43, %v239_v52  ;;  %v282_v54 = vadd.f32 %v281_v47, %v239_v52 }
 0x384   :  { %v2178_v55 = vpack.c.bf16 %v282_v54, %v279_v53  ;;  %v90_v53 = vld [vmem:[%s2394_s5 + $0x8] sm:$0xf] }
 0x385   :  { %v602_v16 = vpop.permute.xlu0 %601  ;;  %v2245_v54 = vsel %vm348_vm3, %v90_v53, 0 }
 0x386   :  { %v350_v56 = vsel %vm348_vm3, %v2178_v55, 0  ;;  %v607_v21 = vsel %vm286_vm2, %v602_v16, 0 }
 0x387   :  { %1682 = vmatpush3.bf16.msra.mxu0 %v350_v56 }
 0x388   :  { %1693 = vmatprep.subr.bf16.mxu0 %v1995_v0 }
 0x389   :  { %v600_v24 = vpop.permute.xlu0 %599 }
 0x38c   :  { %v1842_v57 = vpop.eup %1841 }
 0x38d   :  { %v451_v58 = vsel %vm286_vm2, %v1842_v57, 0.0 }
 0x38e   :  { %452 = vadd.xlane.f32.xlu1 %v451_v58 }
 0x39f   :  { %458 = vrot.lane.b32.xlu1 %v2178_v55, %s1998_s4 }
 0x3a8   :  { %v341_v59 = vpop.xlane.xlu1 %340 }
 0x3a9   :  { %1843 = vrcp.f32 %v341_v59 }
 0x3b3   :  { %v1844_v60 = vpop.eup %1843 }
 0x3b4   :  { %v343_v61 = vmul.f32 %v1844_v60, %v1840_v45 }
 0x3b6   :  { %v344_v62 = vpack.c.bf16 %v343_v61, %v343_v61 }
 0x3b8   :  { %1684 = vmatmul.mubr.msk.bf16.vlgmr.msra.gmra.mrb[8].mxu0 %vm286_vm2, %v344_v62 }
 0x3b9   :  { %1695 = vmatprep.mubr.msk.bf16.mxu0 %vm1996_vm0, %v1995_v0 }
 0x41b   :  { %v453_v2 = vpop.xlane.xlu1 %452 }
 0x41c   :  { %1845 = vrcp.f32 %v453_v2 }
 0x41f   :  { %v459_v3 = vpop.permute.xlu1 %458 }
 0x420   :  { %v464_v4 = vsel %vm348_vm3, %v459_v3, 0 }
 0x421   :  { %1694 = vmatpush3.bf16.msra.mxu0 %v464_v4  ;;  %v2256_v4 = vrot.slane %v2142_v14, 4 }
 0x422   :  { %1705 = vmatprep.subr.bf16.mxu0 %v1995_v0 }
 0x426   :  { %v1846_v5 = vpop.eup %1845 }
 0x427   :  { %v455_v7 = vmul.f32 %v1846_v5, %v1842_v57 }
 0x429   :  { %v456_v8 = vpack.c.bf16 %v455_v7, %v455_v7 }
 0x42b   :  { %1696 = vmatmul.mubr.msk.bf16.vlgmr.msra.gmra.mrb[12].mxu0 %vm286_vm2, %v456_v8 }
 0x42c   :  { %1706 = vmatpush3.bf16.msra.mxu0 %v2203_v9  ;;  %1707 = vmatprep.mubr.msk.bf16.mxu0 %vm1996_vm0, %v1995_v0 }
 0x42d   :  { %1717 = vmatprep.subr.bf16.mxu0 %v1995_v0 }
 0x48b   :  { %v386_v10 = vpop.f32.mrb[8].mxu0 }
 0x48c   :  { %v392_v11 = vpack.c.bf16 %v386_v10, %v386_v10  ;;  %v1685_v12 = vpop.f32.mrb[9].mxu0 }
 0x48d   :  { %v389_v13 = vpop.f32.mrb[10].mxu0 }
 0x48e   :  { %v1686_v15 = vpop.f32.mrb[11].mxu0  ;;  %1708 = vmatmul.mubr.msk.bf16.vlgmr.msra.gmra.mrb[16].mxu0 %vm286_vm2, %v392_v11  ;;  %v91_v13 = vld [vmem:[%s2394_s5 + $0xc] sm:$0xf] }
 0x48f   :  { %1719 = vmatprep.mubr.msk.bf16.mxu0 %vm1996_vm0, %v1995_v0  ;;  %v2272_v16 = vsel %vm348_vm3, %v91_v13, 0 }
 0x4fe   :  { %v500_v17 = vpop.f32.mrb[12].mxu0 }
 0x4ff   :  { %v506_v18 = vpack.c.bf16 %v500_v17, %v500_v17  ;;  %v1697_v19 = vpop.f32.mrb[13].mxu0 }
 0x500   :  { %v503_v20 = vpop.f32.mrb[14].mxu0 }
 0x501   :  { %v1698_v23 = vpop.f32.mrb[15].mxu0  ;;  %1702 = vmatmul.mubr.msk.bf16.vlgmr.msra.gmra.mrb[12].mxu1 %vm286_vm2, %v506_v18 }
 0x502   :  { %1712 = vmatpush3.bf16.xpose.msra.mxu1 %v607_v21  ;;  %1713 = vmatprep.mubr.msk.bf16.mxu1 %vm1996_vm0, %v1995_v0 }
 0x503   :  { %1723 = vmatprep.subr.bf16.mxu1 %v1995_v0 }
 0x509   :  { %1714 = vmatmul.mubr.msk.bf16.vlgmr.msra.gmra.mrb[16].mxu1 %vm286_vm2, %v600_v24 }
 0x50a   :  { %1725 = vmatprep.mubr.msk.bf16.mxu1 %vm1996_vm0, %v1995_v0  ;;  %1724 = vmatpush3.bf16.msra.mxu1 %v2245_v54 }
 0x50b   :  { %1735 = vmatprep.subr.bf16.mxu1 %v1995_v0 }
 0x561   :  { %v593_v25 = vpop.f32.mrb[16].mxu0 }
 0x562   :  { %v1709_v26 = vpop.f32.mrb[17].mxu0 }
 0x563   :  { %v596_v27 = vpop.f32.mrb[18].mxu0 }
 0x564   :  { %v1710_v28 = vpop.f32.mrb[19].mxu0 }
 0x5d4   :  { %v547_v29 = vpop.f32.mrb[12].mxu1 }
 0x5d5   :  { %v2221_v30 = vadd.f32 %v593_v25, %v547_v29  ;;  %v1703_v31 = vpop.f32.mrb[13].mxu1  ;;  %v2297_v29 = vrot.slane %v2178_v55, 4 }
 0x5d6   :  { %v550_v32 = vpop.f32.mrb[14].mxu1 }
 0x5d7   :  { %v1704_v33 = vpop.f32.mrb[15].mxu1 }
 0x5dc   :  { %v643_v34 = vpop.f32.mrb[16].mxu1 }
 0x5dd   :  { %v1715_v35 = vpop.f32.mrb[17].mxu1  ;;  %v649_v36 = vsel %vm286_vm2, %v643_v34, -inf }
 0x5de   :  { %650 = vmax.xlane.f32.xlu1 %v649_v36  ;;  %v646_v37 = vpop.f32.mrb[18].mxu1  ;;  %v988_v35 = vsel %vm348_vm3, %v2297_v29, 0 }
 0x5df   :  { %v1716_v38 = vpop.f32.mrb[19].mxu1 }
 0x5ef   :  { %759 = vrot.lane.b32.xlu1 %v2147_v22, %s2000_s9 }
 0x5f3   :  { %757 = vrot.lane.b32.xlu1 %v2142_v14, %s2000_s9  ;;  %v2264_v14 = vrot.slane %v2147_v22, 4 }
 0x5f5   :  { %v929_v25 = vsel %vm286_vm2, %v2264_v14, 0 }
 0x66b   :  { %v651_v39 = vpop.xlane.xlu1 %650 }
 0x66c   :  { %v652_v40 = vsub.f32 %v643_v34, %v651_v39 }
 0x66e   :  { %v653_v41 = vmul.f32 1.442695, %v652_v40 }
 0x66f   :  { %v760_v49 = vpop.permute.xlu1 %759 }
 0x670   :  { %1847 = vpow2.f32 %v653_v41  ;;  %v765_v51 = vsel %vm286_vm2, %v760_v49, 0 }
 0x673   :  { %v758_v52 = vpop.permute.xlu1 %757 }
 0x67a   :  { %v1848_v42 = vpop.eup %1847 }
 0x67b   :  { %v655_v43 = vsel %vm286_vm2, %v1848_v42, 0.0 }
 0x67c   :  { %656 = vadd.xlane.f32.xlu0 %v655_v43 }
 0x692   :  { %661 = vrot.lane.b32.xlu0 %v2178_v55, %s1999_s28 }
 0x709   :  { %v657_v44 = vpop.xlane.xlu0 %656 }
 0x70a   :  { %1849 = vrcp.f32 %v657_v44 }
 0x70d   :  { %v662_v45 = vpop.permute.xlu0 %661 }
 0x70e   :  { %v667_v46 = vsel %vm348_vm3, %v662_v45, 0 }
 0x70f   :  { %1718 = vmatpush3.bf16.msra.mxu0 %v667_v46 }
 0x710   :  { %1729 = vmatprep.subr.bf16.mxu0 %v1995_v0 }
 0x714   :  { %v1850_v47 = vpop.eup %1849 }
 0x715   :  { %v659_v48 = vmul.f32 %v1850_v47, %v1848_v42 }
 0x717   :  { %v660_v50 = vpack.c.bf16 %v659_v48, %v659_v48 }
 0x719   :  { %1720 = vmatmul.mubr.msk.bf16.vlgmr.msra.gmra.mrb[20].mxu0 %vm286_vm2, %v660_v50 }
 0x71a   :  { %1730 = vmatpush3.bf16.xpose.msra.mxu0 %v765_v51  ;;  %1731 = vmatprep.mubr.msk.bf16.mxu0 %vm1996_vm0, %v1995_v0 }
 0x71b   :  { %1741 = vmatprep.subr.bf16.mxu0 %v1995_v0 }
 0x721   :  { %1732 = vmatmul.mubr.msk.bf16.vlgmr.msra.gmra.mrb[24].mxu0 %vm286_vm2, %v758_v52 }
 0x722   :  { %1743 = vmatprep.mubr.msk.bf16.mxu0 %vm1996_vm0, %v1995_v0  ;;  %1742 = vmatpush3.bf16.msra.mxu0 %v2272_v16 }
 0x723   :  { %1753 = vmatprep.subr.bf16.mxu0 %v1995_v0 }
 0x7ec   :  { %v703_v56 = vpop.f32.mrb[20].mxu0 }
 0x7ed   :  { %v709_v57 = vpack.c.bf16 %v703_v56, %v703_v56  ;;  %v1721_v58 = vpop.f32.mrb[21].mxu0  ;;  %v2318_v56 = vld [vmem:[%s2395_s6] ss:$0 sm:$0xff]  ;;  %s2001_s6 = smov [#allocation10]  }
 0x7ee   :  { %v706_v59 = vpop.f32.mrb[22].mxu0  ;;  %s1546_s0 = sshll.u32 %s2001_s6, 4  ;;  %s1547_s0 = int_to_ptr.vmem [resolvable:$true] %s1546_s0 }
 0x7ef   :  { %v1722_v60 = vpop.f32.mrb[23].mxu0  ;;  %1726 = vmatmul.mubr.msk.bf16.vlgmr.msra.gmra.mrb[20].mxu1 %vm286_vm2, %v709_v57  ;;  %s1959_s27 = scalar_lea.vmem %s1547_s0, 256  ;;  %p1964_p5 = scmp.lt.s32.totalorder %s1547_s0, %s1547_s0 }
 0x7f0   :  { %1737 = vmatprep.mubr.msk.bf16.mxu1 %vm1996_vm0, %v1995_v0  ;;  %p1960_p4 = scmp.ne.s32.totalorder %s1547_s0, %s1959_s27  ;;  %p1965_p6 = scmp.lt.s32.totalorder %s1959_s27, %s1959_s27 }
 0x7f2   :  { %p1966_p7 = por %p1965_p6, %p1964_p5 }
 0x7f4   :  { %v801_v61 = vpop.f32.mrb[24].mxu0  ;;  %p1967_p8 = pnand %p1966_p7, %p1960_p4 }
 0x7f5   :  { %v1733_v62 = vpop.f32.mrb[25].mxu0  ;;  %v807_v63 = vsel %vm286_vm2, %v801_v61, -inf }
 0x7f6   :  { %808 = vmax.xlane.f32.xlu0 %v807_v63  ;;  %v804_v2 = vpop.f32.mrb[26].mxu0 }
 0x7f7   :  { %v1734_v3 = vpop.f32.mrb[27].mxu0 }
 0x80c   :  { %819 = vrot.lane.b32.xlu0 %v2178_v55, %s2000_s9 }
 0x810   :  { %1031 = vrot.lane.b32.xlu0 %v2256_v4, %s1998_s4 }
 0x883   :  { %v809_v5 = vpop.xlane.xlu0 %808 }
 0x884   :  { %v810_v6 = vsub.f32 %v801_v61, %v809_v5 }
 0x886   :  { %v811_v7 = vmul.f32 1.442695, %v810_v6 }
 0x887   :  { %v820_v8 = vpop.permute.xlu0 %819 }
 0x888   :  { %1851 = vpow2.f32 %v811_v7  ;;  %v825_v10 = vsel %vm348_vm3, %v820_v8, 0 }
 0x889   :  { %1736 = vmatpush3.bf16.msra.mxu1 %v825_v10 }
 0x88a   :  { %1747 = vmatprep.subr.bf16.mxu1 %v1995_v0 }
 0x88b   :  { %v1032_v28 = vpop.permute.xlu0 %1031 }
 0x892   :  { %v1852_v11 = vpop.eup %1851 }
 0x893   :  { %v813_v12 = vsel %vm286_vm2, %v1852_v11, 0.0 }
 0x894   :  { %814 = vadd.xlane.f32.xlu1 %v813_v12 }
 0x8a5   :  { %1033 = vrot.lane.b32.xlu1 %v2264_v14, %s1998_s4 }
 0x8c2   :  { %v750_v15 = vpop.f32.mrb[20].mxu1 }
 0x8c3   :  { %v2275_v17 = vadd.f32 %v750_v15, %v2221_v30  ;;  %v1727_v18 = vpop.f32.mrb[21].mxu1 }
 0x8c4   :  { %v753_v19 = vpop.f32.mrb[22].mxu1 }
 0x8c5   :  { %v1728_v22 = vpop.f32.mrb[23].mxu1 }
 0x921   :  { %v815_v20 = vpop.xlane.xlu1 %814 }
 0x922   :  { %1853 = vrcp.f32 %v815_v20 }
 0x925   :  { %v1034_v26 = vpop.permute.xlu1 %1033 }
 0x926   :  { %v1039_v27 = vsel %vm286_vm2, %v1034_v26, 0 }
 0x92c   :  { %v1854_v21 = vpop.eup %1853 }
 0x92d   :  { %v817_v23 = vmul.f32 %v1854_v21, %v1852_v11 }
 0x92f   :  { %v818_v24 = vpack.c.bf16 %v817_v23, %v817_v23 }
 0x931   :  { %1738 = vmatmul.mubr.msk.bf16.vlgmr.msra.gmra.mrb[24].mxu1 %vm286_vm2, %v818_v24 }
 0x932   :  { %1748 = vmatpush3.bf16.xpose.msra.mxu1 %v929_v25  ;;  %1749 = vmatprep.mubr.msk.bf16.mxu1 %vm1996_vm0, %v1995_v0 }
 0x933   :  { %1759 = vmatprep.subr.bf16.mxu1 %v1995_v0 }
 0x939   :  { %1750 = vmatmul.mubr.msk.bf16.vlgmr.msra.gmra.mrb[28].mxu1 %vm286_vm2, %v2256_v4 }
 0x93a   :  { %1760 = vmatpush3.bf16.xpose.msra.mxu1 %v1039_v27  ;;  %1761 = vmatprep.mubr.msk.bf16.mxu1 %vm1996_vm0, %v1995_v0 }
 0x93b   :  { %1771 = vmatprep.subr.bf16.mxu1 %v1995_v0 }
 0x941   :  { %1762 = vmatmul.mubr.msk.bf16.vlgmr.msra.gmra.mrb[32].mxu1 %vm286_vm2, %v1032_v28 }
 0x942   :  { %1772 = vmatpush3.bf16.msra.mxu1 %v2193_v1  ;;  %1773 = vmatprep.mubr.msk.bf16.mxu1 %vm1996_vm0, %v1995_v0 }
 0x943   :  { %1783 = vmatprep.subr.bf16.mxu1 %v1995_v0 }
 0xa04   :  { %v861_v30 = vpop.f32.mrb[24].mxu1 }
 0xa05   :  { %v867_v31 = vpack.c.bf16 %v861_v30, %v861_v30  ;;  %v1739_v32 = vpop.f32.mrb[25].mxu1 }
 0xa06   :  { %v864_v33 = vpop.f32.mrb[26].mxu1 }
 0xa07   :  { %v1740_v34 = vpop.f32.mrb[27].mxu1  ;;  %1744 = vmatmul.mubr.msk.bf16.vlgmr.msra.gmra.mrb[28].mxu0 %vm286_vm2, %v867_v31 }
 0xa08   :  { %1754 = vmatpush3.bf16.msra.mxu0 %v988_v35  ;;  %1755 = vmatprep.mubr.msk.bf16.mxu0 %vm1996_vm0, %v1995_v0 }
 0xa09   :  { %1765 = vmatprep.subr.bf16.mxu0 %v1995_v0 }
 0xa0c   :  { %v965_v1 = vpop.f32.mrb[28].mxu1 }
 0xa0d   :  { %v1751_v36 = vpop.f32.mrb[29].mxu1  ;;  %v971_v55 = vsel %vm286_vm2, %v965_v1, -inf }
 0xa0e   :  { %972 = vmax.xlane.f32.xlu1 %v971_v55  ;;  %v968_v37 = vpop.f32.mrb[30].mxu1 }
 0xa0f   :  { %v1752_v38 = vpop.f32.mrb[31].mxu1 }
 0xa14   :  { %v1075_v39 = vpop.f32.mrb[32].mxu1 }
 0xa15   :  { %v1763_v40 = vpop.f32.mrb[33].mxu1  ;;  %v1081_v41 = vsel %vm286_vm2, %v1075_v39, -inf }
 0xa16   :  { %1082 = vmax.xlane.f32.xlu0 %v1081_v41  ;;  %v1078_v42 = vpop.f32.mrb[34].mxu1 }
 0xa17   :  { %v1764_v43 = vpop.f32.mrb[35].mxu1 }
 0xa9b   :  { %v973_v44 = vpop.xlane.xlu1 %972 }
 0xa9c   :  { %v974_v45 = vsub.f32 %v965_v1, %v973_v44 }
 0xa9e   :  { %v975_v46 = vmul.f32 1.442695, %v974_v45 }
 0xaa0   :  { %1855 = vpow2.f32 %v975_v46 }
 0xaa3   :  { %v1083_v47 = vpop.xlane.xlu0 %1082 }
 0xaa4   :  { %v1084_v48 = vsub.f32 %v1075_v39, %v1083_v47 }
 0xaa6   :  { %v1085_v49 = vmul.f32 1.442695, %v1084_v48 }
 0xaa8   :  { %1857 = vpow2.f32 %v1085_v49 }
 0xaaa   :  { %v1856_v50 = vpop.eup %1855 }
 0xaab   :  { %v977_v51 = vsel %vm286_vm2, %v1856_v50, 0.0 }
 0xaac   :  { %978 = vadd.xlane.f32.xlu0 %v977_v51 }
 0xab2   :  { %v1858_v52 = vpop.eup %1857 }
 0xab3   :  { %v1087_v53 = vsel %vm286_vm2, %v1858_v52, 0.0 }
 0xab4   :  { %1088 = vadd.xlane.f32.xlu1 %v1087_v53 }
 0xac2   :  { %1093 = vrot.lane.b32.xlu0 %v2297_v29, %s1998_s4 }
 0xac5   :  { %1230 = vrot.lane.b32.xlu1 %v2264_v14, %s1999_s28 }
 0xac9   :  { %1228 = vrot.lane.b32.xlu1 %v2256_v4, %s1999_s28 }
 0xada   :  { %v908_v57 = vpop.f32.mrb[28].mxu0 }
 0xadb   :  { %v914_v58 = vadd.f32 %v908_v57, %v2275_v17  ;;  %v1745_v59 = vpop.f32.mrb[29].mxu0 }
 0xadc   :  { %v911_v60 = vpop.f32.mrb[30].mxu0 }
 0xadd   :  { %v921_v61 = vadd.f32 %v2318_v56, %v914_v58  ;;  %v1746_v62 = vpop.f32.mrb[31].mxu0 }
 0xadf   :  { %922 = vst.msk [vmem:[#allocation10] sm:$0xff] %vm122_vm1, %v921_v61 }
 0xb39   :  { %v979_v63 = vpop.xlane.xlu0 %978 }
 0xb3a   :  { %1859 = vrcp.f32 %v979_v63 }
 0xb3d   :  { %v1094_v6 = vpop.permute.xlu0 %1093 }
 0xb3e   :  { %v1099_v8 = vsel %vm348_vm3, %v1094_v6, 0 }
 0xb41   :  { %v1089_v2 = vpop.xlane.xlu1 %1088 }
 0xb42   :  { %1861 = vrcp.f32 %v1089_v2 }
 0xb44   :  { %v1860_v3 = vpop.eup %1859 }
 0xb45   :  { %v981_v5 = vmul.f32 %v1860_v3, %v1856_v50  ;;  %v1231_v22 = vpop.permute.xlu1 %1230 }
 0xb46   :  { %v1236_v24 = vsel %vm286_vm2, %v1231_v22, 0 }
 0xb47   :  { %v982_v7 = vpack.c.bf16 %v981_v5, %v981_v5 }
 0xb49   :  { %1756 = vmatmul.mubr.msk.bf16.vlgmr.msra.gmra.mrb[32].mxu0 %vm286_vm2, %v982_v7  ;;  %v1229_v26 = vpop.permute.xlu1 %1228 }
 0xb4a   :  { %1766 = vmatpush3.bf16.msra.mxu0 %v1099_v8  ;;  %1767 = vmatprep.mubr.msk.bf16.mxu0 %vm1996_vm0, %v1995_v0 }
 0xb4b   :  { %1777 = vmatprep.subr.bf16.mxu0 %v1995_v0 }
 0xb4c   :  { %v1862_v10 = vpop.eup %1861 }
 0xb4d   :  { %v1091_v11 = vmul.f32 %v1862_v10, %v1858_v52 }
 0xb4f   :  { %v1092_v12 = vpack.c.bf16 %v1091_v11, %v1091_v11 }
 0xb51   :  { %1768 = vmatmul.mubr.msk.bf16.vlgmr.msra.gmra.mrb[36].mxu0 %vm286_vm2, %v1092_v12 }
 0xb52   :  { %1778 = vmatpush3.bf16.msra.mxu0 %v2203_v9  ;;  %1779 = vmatprep.mubr.msk.bf16.mxu0 %vm1996_vm0, %v1995_v0 }
 0xb53   :  { %1789 = vmatprep.subr.bf16.mxu0 %v1995_v0 }
 0xc1c   :  { %v1024_v13 = vpop.f32.mrb[32].mxu0 }
 0xc1d   :  { %v1030_v15 = vpack.c.bf16 %v1024_v13, %v1024_v13  ;;  %v1757_v17 = vpop.f32.mrb[33].mxu0 }
 0xc1e   :  { %v1027_v18 = vpop.f32.mrb[34].mxu0 }
 0xc1f   :  { %v1758_v19 = vpop.f32.mrb[35].mxu0  ;;  %1780 = vmatmul.mubr.msk.bf16.vlgmr.msra.gmra.mrb[40].mxu0 %vm286_vm2, %v1030_v15 }
 0xc20   :  { %1791 = vmatprep.mubr.msk.bf16.mxu0 %vm1996_vm0, %v1995_v0 }
 0xc24   :  { %v1135_v20 = vpop.f32.mrb[36].mxu0 }
 0xc25   :  { %v1141_v21 = vpack.c.bf16 %v1135_v20, %v1135_v20  ;;  %v1769_v23 = vpop.f32.mrb[37].mxu0 }
 0xc26   :  { %v1138_v9 = vpop.f32.mrb[38].mxu0 }
 0xc27   :  { %v1770_v25 = vpop.f32.mrb[39].mxu0  ;;  %1774 = vmatmul.mubr.msk.bf16.vlgmr.msra.gmra.mrb[36].mxu1 %vm286_vm2, %v1141_v21 }
 0xc28   :  { %1784 = vmatpush3.bf16.xpose.msra.mxu1 %v1236_v24  ;;  %1785 = vmatprep.mubr.msk.bf16.mxu1 %vm1996_vm0, %v1995_v0 }
 0xc29   :  { %1795 = vmatprep.subr.bf16.mxu1 %v1995_v0 }
 0xc2f   :  { %1786 = vmatmul.mubr.msk.bf16.vlgmr.msra.gmra.mrb[40].mxu1 %vm286_vm2, %v1229_v26 }
 0xc30   :  { %1796 = vmatpush3.bf16.msra.mxu1 %v2245_v54  ;;  %1797 = vmatprep.mubr.msk.bf16.mxu1 %vm1996_vm0, %v1995_v0 }
 0xc31   :  { %1807 = vmatprep.subr.bf16.mxu1 %v1995_v0 }
 0xcf2   :  { %v1222_v27 = vpop.f32.mrb[40].mxu0 }
 0xcf3   :  { %v1781_v28 = vpop.f32.mrb[41].mxu0 }
 0xcf4   :  { %v1225_v30 = vpop.f32.mrb[42].mxu0 }
 0xcf5   :  { %v1782_v31 = vpop.f32.mrb[43].mxu0 }
 0xcfa   :  { %v1179_v32 = vpop.f32.mrb[36].mxu1 }
 0xcfb   :  { %v1223_v33 = vadd.f32 %v1222_v27, %v1179_v32  ;;  %v1775_v34 = vpop.f32.mrb[37].mxu1 }
 0xcfc   :  { %v1182_v35 = vpop.f32.mrb[38].mxu1 }
 0xcfd   :  { %v1776_v1 = vpop.f32.mrb[39].mxu1 }
 0xd02   :  { %v1272_v36 = vpop.f32.mrb[40].mxu1 }
 0xd03   :  { %v1787_v55 = vpop.f32.mrb[41].mxu1  ;;  %v1278_v37 = vsel %vm286_vm2, %v1272_v36, -inf }
 0xd04   :  { %1279 = vmax.xlane.f32.xlu0 %v1278_v37  ;;  %v1275_v54 = vpop.f32.mrb[42].mxu1 }
 0xd05   :  { %v1788_v38 = vpop.f32.mrb[43].mxu1 }
 0xd1a   :  { %1290 = vrot.lane.b32.xlu0 %v2297_v29, %s1999_s28 }
 0xd1e   :  { %1383 = vrot.lane.b32.xlu0 %v2256_v4, %s2000_s9 }
 0xd91   :  { %v1280_v39 = vpop.xlane.xlu0 %1279 }
 0xd92   :  { %v1281_v40 = vsub.f32 %v1272_v36, %v1280_v39 }
 0xd94   :  { %v1282_v41 = vmul.f32 1.442695, %v1281_v40 }
 0xd95   :  { %v1291_v42 = vpop.permute.xlu0 %1290 }
 0xd96   :  { %1863 = vpow2.f32 %v1282_v41  ;;  %v1296_v43 = vsel %vm348_vm3, %v1291_v42, 0 }
 0xd97   :  { %1790 = vmatpush3.bf16.msra.mxu0 %v1296_v43 }
 0xd98   :  { %1801 = vmatprep.subr.bf16.mxu0 %v1995_v0 }
 0xd99   :  { %v1384_v51 = vpop.permute.xlu0 %1383 }
 0xda0   :  { %v1864_v44 = vpop.eup %1863 }
 0xda1   :  { %v1284_v45 = vsel %vm286_vm2, %v1864_v44, 0.0 }
 0xda2   :  { %1285 = vadd.xlane.f32.xlu1 %v1284_v45 }
 0xdb3   :  { %1385 = vrot.lane.b32.xlu1 %v2264_v14, %s2000_s9 }
 0xe2f   :  { %v1286_v46 = vpop.xlane.xlu1 %1285 }
 0xe30   :  { %1865 = vrcp.f32 %v1286_v46 }
 0xe33   :  { %v1386_v48 = vpop.permute.xlu1 %1385 }
 0xe34   :  { %v1391_v50 = vsel %vm286_vm2, %v1386_v48, 0 }
 0xe3a   :  { %v1866_v4 = vpop.eup %1865 }
 0xe3b   :  { %v1288_v47 = vmul.f32 %v1866_v4, %v1864_v44 }
 0xe3d   :  { %v1289_v49 = vpack.c.bf16 %v1288_v47, %v1288_v47 }
 0xe3f   :  { %1792 = vmatmul.mubr.msk.bf16.vlgmr.msra.gmra.mrb[44].mxu0 %vm286_vm2, %v1289_v49 }
 0xe40   :  { %1802 = vmatpush3.bf16.xpose.msra.mxu0 %v1391_v50  ;;  %1803 = vmatprep.mubr.msk.bf16.mxu0 %vm1996_vm0, %v1995_v0 }
 0xe41   :  { %1813 = vmatprep.subr.bf16.mxu0 %v1995_v0 }
 0xe47   :  { %1804 = vmatmul.mubr.msk.bf16.vlgmr.msra.gmra.mrb[48].mxu0 %vm286_vm2, %v1384_v51 }
 0xe48   :  { %1814 = vmatpush3.bf16.msra.mxu0 %v2272_v16  ;;  %1815 = vmatprep.mubr.msk.bf16.mxu0 %vm1996_vm0, %v1995_v0 }
 0xf12   :  { %v1332_v14 = vpop.f32.mrb[44].mxu0 }
 0xf13   :  { %v1338_v52 = vpack.c.bf16 %v1332_v14, %v1332_v14  ;;  %v1793_v53 = vpop.f32.mrb[45].mxu0 }
 0xf14   :  { %v1335_v57 = vpop.f32.mrb[46].mxu0 }
 0xf15   :  { %v1794_v58 = vpop.f32.mrb[47].mxu0  ;;  %1798 = vmatmul.mubr.msk.bf16.vlgmr.msra.gmra.mrb[44].mxu1 %vm286_vm2, %v1338_v52 }
 0xf16   :  { %1809 = vmatprep.mubr.msk.bf16.mxu1 %vm1996_vm0, %v1995_v0 }
 0xf1a   :  { %v1427_v59 = vpop.f32.mrb[48].mxu0 }
 0xf1b   :  { %v1805_v60 = vpop.f32.mrb[49].mxu0  ;;  %v1433_v61 = vsel %vm286_vm2, %v1427_v59, -inf }
 0xf1c   :  { %1434 = vmax.xlane.f32.xlu1 %v1433_v61  ;;  %v1430_v62 = vpop.f32.mrb[50].mxu0 }
 0xf1d   :  { %v1806_v16 = vpop.f32.mrb[51].mxu0 }
 0xfa9   :  { %v1435_v63 = vpop.xlane.xlu1 %1434 }
 0xfaa   :  { %v1436_v2 = vsub.f32 %v1427_v59, %v1435_v63 }
 0xfac   :  { %v1437_v3 = vmul.f32 1.442695, %v1436_v2 }
 0xfae   :  { %1867 = vpow2.f32 %v1437_v3 }
 0xfb8   :  { %v1868_v5 = vpop.eup %1867 }
 0xfb9   :  { %v1439_v6 = vsel %vm286_vm2, %v1868_v5, 0.0 }
 0xfba   :  { %1440 = vadd.xlane.f32.xlu0 %v1439_v6 }
 0xfd0   :  { %1445 = vrot.lane.b32.xlu0 %v2297_v29, %s2000_s9 }
 0xfe8   :  { %v1376_v7 = vpop.f32.mrb[44].mxu1 }
 0xfe9   :  { %v1382_v0 = vadd.f32 %v1376_v7, %v1223_v33  ;;  %v1799_v8 = vpop.f32.mrb[45].mxu1 }
 0xfea   :  { %v1379_v10 = vpop.f32.mrb[46].mxu1 }
 0xfeb   :  { %v1800_v11 = vpop.f32.mrb[47].mxu1 }
0x1047   :  { %v1441_v12 = vpop.xlane.xlu0 %1440 }
0x1048   :  { %1869 = vrcp.f32 %v1441_v12 }
0x104b   :  { %v1446_v13 = vpop.permute.xlu0 %1445 }
0x104c   :  { %v1451_v15 = vsel %vm348_vm3, %v1446_v13, 0 }
0x104d   :  { %1808 = vmatpush3.bf16.msra.mxu1 %v1451_v15 }
0x1052   :  { %v1870_v17 = vpop.eup %1869 }
0x1053   :  { %v1443_v18 = vmul.f32 %v1870_v17, %v1868_v5 }
0x1055   :  { %v1444_v19 = vpack.c.bf16 %v1443_v18, %v1443_v18 }
0x1057   :  { %1810 = vmatmul.mubr.msk.bf16.vlgmr.msra.gmra.mrb[48].mxu1 %vm286_vm2, %v1444_v19 }
0x112a   :  { %v1487_v22 = vpop.f32.mrb[48].mxu1 }
0x112b   :  { %v1493_v20 = vpack.c.bf16 %v1487_v22, %v1487_v22  ;;  %v1811_v21 = vpop.f32.mrb[49].mxu1 }
0x112c   :  { %v1490_v29 = vpop.f32.mrb[50].mxu1 }
0x112d   :  { %v1812_v23 = vpop.f32.mrb[51].mxu1  ;;  %1816 = vmatmul.mubr.msk.bf16.vlgmr.msra.gmra.mrb[52].mxu0 %vm286_vm2, %v1493_v20 }
0x1200   :  { %v1531_v9 = vpop.f32.mrb[52].mxu0 }
0x1201   :  { %v1537_v24 = vadd.f32 %v1531_v9, %v1382_v0  ;;  %v1817_v25 = vpop.f32.mrb[53].mxu0 }
0x1202   :  { %v1534_v26 = vpop.f32.mrb[54].mxu0 }
0x1203   :  { %v1538_v27 = vadd.f32 %v2318_v56, %v1537_v24  ;;  %v1818_v28 = vpop.f32.mrb[55].mxu0 }
0x1205   :  { %1540 = vst.msk [vmem:[#allocation10 + $0x8] sm:$0xff] %vm122_vm1, %v1538_v27 }
0x1206   :  { %1970 = shalt.err (!%p1967_p8)
}
0x1207   :  { %s1971_s19 = scalar_lea.hbm %s2396_s7, 256 }
0x1208   :  { %p1972_p9 = scmp.ne.s32.totalorder %s2396_s7, %s1971_s19  ;;  %p1975_p10 = scmp.lt.u32.totalorder %s1971_s19, %s2396_s7 }
0x120a   :  { %p1977_p11 = pnand %p1975_p10, %p1972_p9 }
0x120c   :  { %1980 = shalt.err (!%p1977_p11)
}
0x120d   :  { %s2002_s24 = smov 128   ;;  %s2003_s1 = smov 8  }
0x120e   :  { %1552 = dma.vmem_to_hbm [thread:$0]  %s1547_s0, 256, %s2396_s7, [#allocation4], %s2002_s24, %s2002_s24, %s2003_s1  }
0x120f   :  { %1987 = dma.done.wait [#allocation4], 256  }
0x1210   :  { %1988 = vsyncadd [#allocation4], 4294967040 }
0x1211   :  { %1556 = vsyncpa [#allocation3], 1 }
0x1212   :  { %1557 = vsyncpa [#allocation6], 1 }
0x1213   :  { %1558 = vsyncpa [#allocation9], 1 }
0x1214   :  { %1559 = vsyncpa [#allocation4], 1 }

</bundles_post_ra>
